<compile_context>
chip_gen: v7x
topology: tpu7x:2x2x1
jax: 0.10.0
libtpu: 0.0.40
codegen_flags: <defaults>
</compile_context>

<pallas_src>
import functools

import jax
import jax.numpy as jnp
from jax.experimental import pallas as pl
from jax.experimental.pallas import tpu as pltpu


# ------------------------- fused TripletIMP kernel --------------------------
def _triplet_imp_kernel(num_layers, D,
                        x_ref, ef_ref, gi_ref, gj_ref, agg_ref,
                        nwih_ref, nwhh_ref, nbi_ref, nbh_ref,
                        ewih_ref, ewhh_ref, ebi_ref, ebh_ref,
                        wxi_ref, wxj_ref, wef_ref, bg_ref,
                        x_out_ref, ef_out_ref):
    x = x_ref[...].astype(jnp.float32)    # [N, D]
    ef = ef_ref[...].astype(jnp.float32)  # [E, D]

    # Weights / operators loaded once, reused across the unrolled layer loop.
    nwih, nwhh = nwih_ref[...], nwhh_ref[...]      # [D, 3D]
    nbi, nbh = nbi_ref[...], nbh_ref[...]          # [1, 3D]
    ewih, ewhh = ewih_ref[...], ewhh_ref[...]
    ebi, ebh = ebi_ref[...], ebh_ref[...]
    gi, gj, agg = gi_ref[...], gj_ref[...], agg_ref[...]   # [E,N],[E,N],[N,E]
    wxi, wxj, wef = wxi_ref[...], wxj_ref[...], wef_ref[...]  # [D,2],[D,2],[D,4]
    bg = bg_ref[...]                                           # [1, 4]

    def gru(inp, h, wih, whh, bi, bh):
        # PyTorch nn.GRUCell semantics; gate order (r, z, n) packed on the lane axis.
        gx = jnp.dot(inp, wih, preferred_element_type=jnp.float32) + bi   # [R, 3D]
        gh = jnp.dot(h, whh, preferred_element_type=jnp.float32) + bh     # [R, 3D]
        r = jax.nn.sigmoid(gx[:, 0:D] + gh[:, 0:D])
        z = jax.nn.sigmoid(gx[:, D:2 * D] + gh[:, D:2 * D])
        n = jnp.tanh(gx[:, 2 * D:3 * D] + r * gh[:, 2 * D:3 * D])
        return (1.0 - z) * n + z * h

    # x = node_gru(x); edge_feature = edge_gru(edge_feature)  (hidden = zeros)
    x = gru(x, jnp.zeros_like(x), nwih, nwhh, nbi, nbh)
    ef = gru(ef, jnp.zeros_like(ef), ewih, ewhh, ebi, ebh)

    for _ in range(num_layers):   # static unroll (num_layers is a Python int)
        # Gather target/source node features as one-hot matmuls (MXU).
        xi = jnp.dot(gi, x, preferred_element_type=jnp.float32)   # [E, D]  x_i (targets)
        xj = jnp.dot(gj, x, preferred_element_type=jnp.float32)   # [E, D]  x_j (sources)

        # Stacked gate pre-activations: 3 small matmuls instead of 8 width-1 ones.
        gxi = jnp.dot(xi, wxi, preferred_element_type=jnp.float32)  # [E, 2] (subj_node, subj_edge)
        gxj = jnp.dot(xj, wxj, preferred_element_type=jnp.float32)  # [E, 2] (obj_node,  obj_edge)
        gef = jnp.dot(ef, wef, preferred_element_type=jnp.float32)  # [E, 4] ef-part of all gates

        g_sn = jax.nn.sigmoid(gxi[:, 0:1] + gef[:, 0:1] + bg[:, 0:1])
        g_on = jax.nn.sigmoid(gxj[:, 0:1] + gef[:, 1:2] + bg[:, 1:2])
        g_se = jax.nn.sigmoid(gxi[:, 1:2] + gef[:, 2:3] + bg[:, 2:3])
        g_oe = jax.nn.sigmoid(gxj[:, 1:2] + gef[:, 3:4] + bg[:, 3:4])

        node_message = (g_sn + g_on) * ef          # [E, D]
        edge_message = g_se * xi + g_oe * xj       # [E, D]

        # scatter-mean onto target nodes: one matmul with the precomputed,
        # degree-normalized operator (isolated nodes get exactly 0, as scatter_mean).
        node_agg = jnp.dot(agg, node_message, preferred_element_type=jnp.float32)  # [N, D]

        x = gru(node_agg, x, nwih, nwhh, nbi, nbh)
        ef = gru(edge_message, ef, ewih, ewhh, ebi, ebh)

    x_out_ref[...] = x.astype(x_out_ref.dtype)
    ef_out_ref[...] = ef.astype(ef_out_ref.dtype)


# ------------------------------ wrapper / glue -------------------------------
def _preprocess(params, edge_index, N, D):
    """Hoisted once per forward: pack GRU/gate weights and build gather/scatter ops."""
    def gru_pack(p):
        return (jnp.transpose(p["w_ih"]),            # [D, 3D] (r,z,n blocks)
                jnp.transpose(p["w_hh"]),            # [D, 3D]
                p["b_ih"].reshape(1, 3 * D),
                p["b_hh"].reshape(1, 3 * D))

    nwih, nwhh, nbi, nbh = gru_pack(params["node_gru"])
    ewih, ewhh, ebi, ebh = gru_pack(params["edge_gru"])

    w_sn, b_sn = params["subj_node_gate"]["w"], params["subj_node_gate"]["b"]
    w_on, b_on = params["obj_node_gate"]["w"], params["obj_node_gate"]["b"]
    w_se, b_se = params["subj_edge_gate"]["w"], params["subj_edge_gate"]["b"]
    w_oe, b_oe = params["obj_edge_gate"]["w"], params["obj_edge_gate"]["b"]

    # Linear(cat([a, ef])) split into a-part (first D cols) and ef-part (last D cols).
    wxi = jnp.concatenate([w_sn[:, :D], w_se[:, :D]], axis=0).T          # [D, 2]
    wxj = jnp.concatenate([w_on[:, :D], w_oe[:, :D]], axis=0).T          # [D, 2]
    wef = jnp.concatenate([w_sn[:, D:], w_on[:, D:],
                           w_se[:, D:], w_oe[:, D:]], axis=0).T          # [D, 4]
    bg = jnp.concatenate([b_sn, b_on, b_se, b_oe]).reshape(1, 4)

    src = edge_index[0].astype(jnp.int32)   # j (source)
    tgt = edge_index[1].astype(jnp.int32)   # i (target / aggregation index)
    node_ids = jnp.arange(N, dtype=jnp.int32)
    gi = (tgt[:, None] == node_ids[None, :]).astype(jnp.float32)         # [E, N]
    gj = (src[:, None] == node_ids[None, :]).astype(jnp.float32)         # [E, N]
    deg = jnp.sum(gi, axis=0)                                            # [N]
    agg = gi.T / jnp.maximum(deg, 1.0)[:, None]                          # [N, E] mean-scatter

    return (gi, gj, agg, nwih, nwhh, nbi, nbh, ewih, ewhh, ebi, ebh,
            wxi, wxj, wef, bg)


@functools.partial(jax.jit, static_argnums=4)
def triplet_imp_forward(x, edge_feature, edge_index, params, num_layers):
    N, D = x.shape
    E = edge_feature.shape[0]
    pre = _preprocess(params, edge_index, N, D)

    vmem = pl.BlockSpec(memory_space=pltpu.MemorySpace.VMEM)
    kernel = functools.partial(_triplet_imp_kernel, num_layers, D)
    x_out, ef_out = pl.pallas_call(
        kernel,
        out_shape=(jax.ShapeDtypeStruct((N, D), jnp.float32),
                   jax.ShapeDtypeStruct((E, D), jnp.float32)),
        in_specs=[vmem] * 17,
        out_specs=(vmem, vmem),
    )(x, edge_feature, *pre)
    return x_out, ef_out


# --------------------------------- params ------------------------------------
def init_params(key, dim_node):
    D = dim_node
    keys = jax.random.split(key, 16)

    def u(k, shape, bound):
        return jax.random.uniform(k, shape, jnp.float32, -bound, bound)

    kgru = 1.0 / (D ** 0.5)
    params = {}
    for i, name in enumerate(("node_gru", "edge_gru")):
        b = 4 * i
        params[name] = dict(
            w_ih=u(keys[b + 0], (3 * D, D), kgru),
            w_hh=u(keys[b + 1], (3 * D, D), kgru),
            b_ih=u(keys[b + 2], (3 * D,), kgru),
            b_hh=u(keys[b + 3], (3 * D,), kgru),
        )
    klin = 1.0 / ((2 * D) ** 0.5)
    for i, name in enumerate(("subj_node_gate", "obj_node_gate",
                              "subj_edge_gate", "obj_edge_gate")):
        params[name] = dict(
            w=u(keys[8 + 2 * i], (1, 2 * D), klin),
            b=u(keys[9 + 2 * i], (1,), klin),
        )
    return params


if __name__ == "__main__":
    key = jax.random.PRNGKey(0)
    D, N, E, num_layers = 32, 8, 16, 2

    k_x, k_e, k_src, k_tgt, k_p = jax.random.split(key, 5)
    x = jax.random.normal(k_x, (N, D), jnp.float32)
    edge_feature = jax.random.normal(k_e, (E, D), jnp.float32)
    src = jax.random.randint(k_src, (E,), 0, N, dtype=jnp.int32)
    tgt = jax.random.randint(k_tgt, (E,), 0, N, dtype=jnp.int32)
    edge_index = jnp.stack([src, tgt], axis=0)          # [2, E]

    params = init_params(k_p, D)

    x_out, ef_out = triplet_imp_forward(x, edge_feature, edge_index, params, num_layers)
    jax.block_until_ready((x_out, ef_out))
    assert x_out.shape == (N, D) and ef_out.shape == (E, D)
    assert bool(jnp.all(jnp.isfinite(x_out))) and bool(jnp.all(jnp.isfinite(ef_out)))
    print("KERNEL_OK")
</pallas_src>

<mosaic_0001>
module attributes {stable_mosaic.version = 11 : i64} {
  func.func @_triplet_imp_kernel(%arg0: memref<8x32xf32, #tpu.memory_space<vmem>>, %arg1: memref<16x32xf32, #tpu.memory_space<vmem>>, %arg2: memref<16x8xf32, #tpu.memory_space<vmem>>, %arg3: memref<16x8xf32, #tpu.memory_space<vmem>>, %arg4: memref<8x16xf32, #tpu.memory_space<vmem>>, %arg5: memref<32x96xf32, #tpu.memory_space<vmem>>, %arg6: memref<32x96xf32, #tpu.memory_space<vmem>>, %arg7: memref<1x96xf32, #tpu.memory_space<vmem>>, %arg8: memref<1x96xf32, #tpu.memory_space<vmem>>, %arg9: memref<32x96xf32, #tpu.memory_space<vmem>>, %arg10: memref<32x96xf32, #tpu.memory_space<vmem>>, %arg11: memref<1x96xf32, #tpu.memory_space<vmem>>, %arg12: memref<1x96xf32, #tpu.memory_space<vmem>>, %arg13: memref<32x2xf32, #tpu.memory_space<vmem>>, %arg14: memref<32x2xf32, #tpu.memory_space<vmem>>, %arg15: memref<32x4xf32, #tpu.memory_space<vmem>>, %arg16: memref<1x4xf32, #tpu.memory_space<vmem>>, %arg17: memref<8x32xf32, #tpu.memory_space<vmem>>, %arg18: memref<16x32xf32, #tpu.memory_space<vmem>>) attributes {dimension_semantics = [], scalar_prefetch = 0 : i64, scratch_operands = 0 : i64, tpu.core_type = #tpu.core_type<tc>} {
    %c0 = arith.constant 0 : index
    %c0_0 = arith.constant 0 : index
    %0 = vector.load %arg0[%c0, %c0_0] : memref<8x32xf32, #tpu.memory_space<vmem>>, vector<8x32xf32>
    %c0_1 = arith.constant 0 : index
    %c0_2 = arith.constant 0 : index
    %1 = vector.load %arg1[%c0_1, %c0_2] : memref<16x32xf32, #tpu.memory_space<vmem>>, vector<16x32xf32>
    %c0_3 = arith.constant 0 : index
    %c0_4 = arith.constant 0 : index
    %2 = vector.load %arg5[%c0_3, %c0_4] : memref<32x96xf32, #tpu.memory_space<vmem>>, vector<32x96xf32>
    %c0_5 = arith.constant 0 : index
    %c0_6 = arith.constant 0 : index
    %3 = vector.load %arg6[%c0_5, %c0_6] : memref<32x96xf32, #tpu.memory_space<vmem>>, vector<32x96xf32>
    %c0_7 = arith.constant 0 : index
    %c0_8 = arith.constant 0 : index
    %4 = vector.load %arg7[%c0_7, %c0_8] : memref<1x96xf32, #tpu.memory_space<vmem>>, vector<1x96xf32>
    %c0_9 = arith.constant 0 : index
    %c0_10 = arith.constant 0 : index
    %5 = vector.load %arg8[%c0_9, %c0_10] : memref<1x96xf32, #tpu.memory_space<vmem>>, vector<1x96xf32>
    %c0_11 = arith.constant 0 : index
    %c0_12 = arith.constant 0 : index
    %6 = vector.load %arg9[%c0_11, %c0_12] : memref<32x96xf32, #tpu.memory_space<vmem>>, vector<32x96xf32>
    %c0_13 = arith.constant 0 : index
    %c0_14 = arith.constant 0 : index
    %7 = vector.load %arg10[%c0_13, %c0_14] : memref<32x96xf32, #tpu.memory_space<vmem>>, vector<32x96xf32>
    %c0_15 = arith.constant 0 : index
    %c0_16 = arith.constant 0 : index
    %8 = vector.load %arg11[%c0_15, %c0_16] : memref<1x96xf32, #tpu.memory_space<vmem>>, vector<1x96xf32>
    %c0_17 = arith.constant 0 : index
    %c0_18 = arith.constant 0 : index
    %9 = vector.load %arg12[%c0_17, %c0_18] : memref<1x96xf32, #tpu.memory_space<vmem>>, vector<1x96xf32>
    %c0_19 = arith.constant 0 : index
    %c0_20 = arith.constant 0 : index
    %10 = vector.load %arg2[%c0_19, %c0_20] : memref<16x8xf32, #tpu.memory_space<vmem>>, vector<16x8xf32>
    %c0_21 = arith.constant 0 : index
    %c0_22 = arith.constant 0 : index
    %11 = vector.load %arg3[%c0_21, %c0_22] : memref<16x8xf32, #tpu.memory_space<vmem>>, vector<16x8xf32>
    %c0_23 = arith.constant 0 : index
    %c0_24 = arith.constant 0 : index
    %12 = vector.load %arg4[%c0_23, %c0_24] : memref<8x16xf32, #tpu.memory_space<vmem>>, vector<8x16xf32>
    %c0_25 = arith.constant 0 : index
    %c0_26 = arith.constant 0 : index
    %13 = vector.load %arg13[%c0_25, %c0_26] : memref<32x2xf32, #tpu.memory_space<vmem>>, vector<32x2xf32>
    %c0_27 = arith.constant 0 : index
    %c0_28 = arith.constant 0 : index
    %14 = vector.load %arg14[%c0_27, %c0_28] : memref<32x2xf32, #tpu.memory_space<vmem>>, vector<32x2xf32>
    %c0_29 = arith.constant 0 : index
    %c0_30 = arith.constant 0 : index
    %15 = vector.load %arg15[%c0_29, %c0_30] : memref<32x4xf32, #tpu.memory_space<vmem>>, vector<32x4xf32>
    %c0_31 = arith.constant 0 : index
    %c0_32 = arith.constant 0 : index
    %16 = vector.load %arg16[%c0_31, %c0_32] : memref<1x4xf32, #tpu.memory_space<vmem>>, vector<1x4xf32>
    %cst = arith.constant 0.000000e+00 : f32
    %17 = vector.broadcast %cst : f32 to vector<8x32xf32>
    %cst_33 = arith.constant dense<0.000000e+00> : vector<8x96xf32>
    %18 = tpu.matmul %0, %2, %cst_33 {dimension_numbers = #tpu.dot_dimension_numbers<[1], [0], [0], [1], [0, 0, 1, 1], [], []>} : vector<8x32xf32>, vector<32x96xf32>, vector<8x96xf32> -> vector<8x96xf32>
    %19 = vector.broadcast %4 : vector<1x96xf32> to vector<8x96xf32>
    %20 = arith.addf %18, %19 : vector<8x96xf32>
    %cst_34 = arith.constant dense<0.000000e+00> : vector<8x96xf32>
    %21 = tpu.matmul %17, %3, %cst_34 {dimension_numbers = #tpu.dot_dimension_numbers<[1], [0], [0], [1], [0, 0, 1, 1], [], []>} : vector<8x32xf32>, vector<32x96xf32>, vector<8x96xf32> -> vector<8x96xf32>
    %22 = vector.broadcast %5 : vector<1x96xf32> to vector<8x96xf32>
    %23 = arith.addf %21, %22 : vector<8x96xf32>
    %24 = vector.extract_strided_slice %20 {offsets = [0, 0], sizes = [8, 32], strides = [1, 1]} : vector<8x96xf32> to vector<8x32xf32>
    %25 = vector.extract_strided_slice %23 {offsets = [0, 0], sizes = [8, 32], strides = [1, 1]} : vector<8x96xf32> to vector<8x32xf32>
    %26 = arith.addf %24, %25 : vector<8x32xf32>
    %27 = arith.negf %26 : vector<8x32xf32>
    %28 = math.exp %27 : vector<8x32xf32>
    %cst_35 = arith.constant 1.000000e+00 : f32
    %29 = vector.broadcast %cst_35 : f32 to vector<8x32xf32>
    %30 = arith.addf %29, %28 : vector<8x32xf32>
    %31 = arith.divf %29, %30 : vector<8x32xf32>
    %32 = vector.extract_strided_slice %20 {offsets = [0, 32], sizes = [8, 32], strides = [1, 1]} : vector<8x96xf32> to vector<8x32xf32>
    %33 = vector.extract_strided_slice %23 {offsets = [0, 32], sizes = [8, 32], strides = [1, 1]} : vector<8x96xf32> to vector<8x32xf32>
    %34 = arith.addf %32, %33 : vector<8x32xf32>
    %35 = arith.negf %34 : vector<8x32xf32>
    %36 = math.exp %35 : vector<8x32xf32>
    %cst_36 = arith.constant 1.000000e+00 : f32
    %37 = vector.broadcast %cst_36 : f32 to vector<8x32xf32>
    %38 = arith.addf %37, %36 : vector<8x32xf32>
    %39 = arith.divf %37, %38 : vector<8x32xf32>
    %40 = vector.extract_strided_slice %20 {offsets = [0, 64], sizes = [8, 32], strides = [1, 1]} : vector<8x96xf32> to vector<8x32xf32>
    %41 = vector.extract_strided_slice %23 {offsets = [0, 64], sizes = [8, 32], strides = [1, 1]} : vector<8x96xf32> to vector<8x32xf32>
    %42 = arith.mulf %31, %41 : vector<8x32xf32>
    %43 = arith.addf %40, %42 : vector<8x32xf32>
    %44 = math.tanh %43 : vector<8x32xf32>
    %cst_37 = arith.constant 1.000000e+00 : f32
    %45 = vector.broadcast %cst_37 : f32 to vector<8x32xf32>
    %46 = arith.subf %45, %39 : vector<8x32xf32>
    %47 = arith.mulf %46, %44 : vector<8x32xf32>
    %48 = arith.mulf %39, %17 : vector<8x32xf32>
    %49 = arith.addf %47, %48 : vector<8x32xf32>
    %cst_38 = arith.constant 0.000000e+00 : f32
    %50 = vector.broadcast %cst_38 : f32 to vector<16x32xf32>
    %cst_39 = arith.constant dense<0.000000e+00> : vector<16x96xf32>
    %51 = tpu.matmul %1, %6, %cst_39 {dimension_numbers = #tpu.dot_dimension_numbers<[1], [0], [0], [1], [0, 0, 1, 1], [], []>} : vector<16x32xf32>, vector<32x96xf32>, vector<16x96xf32> -> vector<16x96xf32>
    %52 = vector.broadcast %8 : vector<1x96xf32> to vector<16x96xf32>
    %53 = arith.addf %51, %52 : vector<16x96xf32>
    %cst_40 = arith.constant dense<0.000000e+00> : vector<16x96xf32>
    %54 = tpu.matmul %50, %7, %cst_40 {dimension_numbers = #tpu.dot_dimension_numbers<[1], [0], [0], [1], [0, 0, 1, 1], [], []>} : vector<16x32xf32>, vector<32x96xf32>, vector<16x96xf32> -> vector<16x96xf32>
    %55 = vector.broadcast %9 : vector<1x96xf32> to vector<16x96xf32>
    %56 = arith.addf %54, %55 : vector<16x96xf32>
    %57 = vector.extract_strided_slice %53 {offsets = [0, 0], sizes = [16, 32], strides = [1, 1]} : vector<16x96xf32> to vector<16x32xf32>
    %58 = vector.extract_strided_slice %56 {offsets = [0, 0], sizes = [16, 32], strides = [1, 1]} : vector<16x96xf32> to vector<16x32xf32>
    %59 = arith.addf %57, %58 : vector<16x32xf32>
    %60 = arith.negf %59 : vector<16x32xf32>
    %61 = math.exp %60 : vector<16x32xf32>
    %cst_41 = arith.constant 1.000000e+00 : f32
    %62 = vector.broadcast %cst_41 : f32 to vector<16x32xf32>
    %63 = arith.addf %62, %61 : vector<16x32xf32>
    %64 = arith.divf %62, %63 : vector<16x32xf32>
    %65 = vector.extract_strided_slice %53 {offsets = [0, 32], sizes = [16, 32], strides = [1, 1]} : vector<16x96xf32> to vector<16x32xf32>
    %66 = vector.extract_strided_slice %56 {offsets = [0, 32], sizes = [16, 32], strides = [1, 1]} : vector<16x96xf32> to vector<16x32xf32>
    %67 = arith.addf %65, %66 : vector<16x32xf32>
    %68 = arith.negf %67 : vector<16x32xf32>
    %69 = math.exp %68 : vector<16x32xf32>
    %cst_42 = arith.constant 1.000000e+00 : f32
    %70 = vector.broadcast %cst_42 : f32 to vector<16x32xf32>
    %71 = arith.addf %70, %69 : vector<16x32xf32>
    %72 = arith.divf %70, %71 : vector<16x32xf32>
    %73 = vector.extract_strided_slice %53 {offsets = [0, 64], sizes = [16, 32], strides = [1, 1]} : vector<16x96xf32> to vector<16x32xf32>
    %74 = vector.extract_strided_slice %56 {offsets = [0, 64], sizes = [16, 32], strides = [1, 1]} : vector<16x96xf32> to vector<16x32xf32>
    %75 = arith.mulf %64, %74 : vector<16x32xf32>
    %76 = arith.addf %73, %75 : vector<16x32xf32>
    %77 = math.tanh %76 : vector<16x32xf32>
    %cst_43 = arith.constant 1.000000e+00 : f32
    %78 = vector.broadcast %cst_43 : f32 to vector<16x32xf32>
    %79 = arith.subf %78, %72 : vector<16x32xf32>
    %80 = arith.mulf %79, %77 : vector<16x32xf32>
    %81 = arith.mulf %72, %50 : vector<16x32xf32>
    %82 = arith.addf %80, %81 : vector<16x32xf32>
    %cst_44 = arith.constant dense<0.000000e+00> : vector<16x32xf32>
    %83 = tpu.matmul %10, %49, %cst_44 {dimension_numbers = #tpu.dot_dimension_numbers<[1], [0], [0], [1], [0, 0, 1, 1], [], []>} : vector<16x8xf32>, vector<8x32xf32>, vector<16x32xf32> -> vector<16x32xf32>
    %cst_45 = arith.constant dense<0.000000e+00> : vector<16x32xf32>
    %84 = tpu.matmul %11, %49, %cst_45 {dimension_numbers = #tpu.dot_dimension_numbers<[1], [0], [0], [1], [0, 0, 1, 1], [], []>} : vector<16x8xf32>, vector<8x32xf32>, vector<16x32xf32> -> vector<16x32xf32>
    %cst_46 = arith.constant dense<0.000000e+00> : vector<16x2xf32>
    %85 = tpu.matmul %83, %13, %cst_46 {dimension_numbers = #tpu.dot_dimension_numbers<[1], [0], [0], [1], [0, 0, 1, 1], [], []>} : vector<16x32xf32>, vector<32x2xf32>, vector<16x2xf32> -> vector<16x2xf32>
    %cst_47 = arith.constant dense<0.000000e+00> : vector<16x2xf32>
    %86 = tpu.matmul %84, %14, %cst_47 {dimension_numbers = #tpu.dot_dimension_numbers<[1], [0], [0], [1], [0, 0, 1, 1], [], []>} : vector<16x32xf32>, vector<32x2xf32>, vector<16x2xf32> -> vector<16x2xf32>
    %cst_48 = arith.constant dense<0.000000e+00> : vector<16x4xf32>
    %87 = tpu.matmul %82, %15, %cst_48 {dimension_numbers = #tpu.dot_dimension_numbers<[1], [0], [0], [1], [0, 0, 1, 1], [], []>} : vector<16x32xf32>, vector<32x4xf32>, vector<16x4xf32> -> vector<16x4xf32>
    %88 = vector.extract_strided_slice %85 {offsets = [0, 0], sizes = [16, 1], strides = [1, 1]} : vector<16x2xf32> to vector<16x1xf32>
    %89 = vector.extract_strided_slice %87 {offsets = [0, 0], sizes = [16, 1], strides = [1, 1]} : vector<16x4xf32> to vector<16x1xf32>
    %90 = arith.addf %88, %89 : vector<16x1xf32>
    %91 = vector.extract_strided_slice %16 {offsets = [0, 0], sizes = [1, 1], strides = [1, 1]} : vector<1x4xf32> to vector<1x1xf32>
    %92 = vector.broadcast %91 : vector<1x1xf32> to vector<16x1xf32>
    %93 = arith.addf %90, %92 : vector<16x1xf32>
    %94 = arith.negf %93 : vector<16x1xf32>
    %95 = math.exp %94 : vector<16x1xf32>
    %cst_49 = arith.constant 1.000000e+00 : f32
    %96 = vector.broadcast %cst_49 : f32 to vector<16x1xf32>
    %97 = arith.addf %96, %95 : vector<16x1xf32>
    %98 = arith.divf %96, %97 : vector<16x1xf32>
    %99 = vector.extract_strided_slice %86 {offsets = [0, 0], sizes = [16, 1], strides = [1, 1]} : vector<16x2xf32> to vector<16x1xf32>
    %100 = vector.extract_strided_slice %87 {offsets = [0, 1], sizes = [16, 1], strides = [1, 1]} : vector<16x4xf32> to vector<16x1xf32>
    %101 = arith.addf %99, %100 : vector<16x1xf32>
    %102 = vector.extract_strided_slice %16 {offsets = [0, 1], sizes = [1, 1], strides = [1, 1]} : vector<1x4xf32> to vector<1x1xf32>
    %103 = vector.broadcast %102 : vector<1x1xf32> to vector<16x1xf32>
    %104 = arith.addf %101, %103 : vector<16x1xf32>
    %105 = arith.negf %104 : vector<16x1xf32>
    %106 = math.exp %105 : vector<16x1xf32>
    %cst_50 = arith.constant 1.000000e+00 : f32
    %107 = vector.broadcast %cst_50 : f32 to vector<16x1xf32>
    %108 = arith.addf %107, %106 : vector<16x1xf32>
    %109 = arith.divf %107, %108 : vector<16x1xf32>
    %110 = vector.extract_strided_slice %85 {offsets = [0, 1], sizes = [16, 1], strides = [1, 1]} : vector<16x2xf32> to vector<16x1xf32>
    %111 = vector.extract_strided_slice %87 {offsets = [0, 2], sizes = [16, 1], strides = [1, 1]} : vector<16x4xf32> to vector<16x1xf32>
    %112 = arith.addf %110, %111 : vector<16x1xf32>
    %113 = vector.extract_strided_slice %16 {offsets = [0, 2], sizes = [1, 1], strides = [1, 1]} : vector<1x4xf32> to vector<1x1xf32>
    %114 = vector.broadcast %113 : vector<1x1xf32> to vector<16x1xf32>
    %115 = arith.addf %112, %114 : vector<16x1xf32>
    %116 = arith.negf %115 : vector<16x1xf32>
    %117 = math.exp %116 : vector<16x1xf32>
    %cst_51 = arith.constant 1.000000e+00 : f32
    %118 = vector.broadcast %cst_51 : f32 to vector<16x1xf32>
    %119 = arith.addf %118, %117 : vector<16x1xf32>
    %120 = arith.divf %118, %119 : vector<16x1xf32>
    %121 = vector.extract_strided_slice %86 {offsets = [0, 1], sizes = [16, 1], strides = [1, 1]} : vector<16x2xf32> to vector<16x1xf32>
    %122 = vector.extract_strided_slice %87 {offsets = [0, 3], sizes = [16, 1], strides = [1, 1]} : vector<16x4xf32> to vector<16x1xf32>
    %123 = arith.addf %121, %122 : vector<16x1xf32>
    %124 = vector.extract_strided_slice %16 {offsets = [0, 3], sizes = [1, 1], strides = [1, 1]} : vector<1x4xf32> to vector<1x1xf32>
    %125 = vector.broadcast %124 : vector<1x1xf32> to vector<16x1xf32>
    %126 = arith.addf %123, %125 : vector<16x1xf32>
    %127 = arith.negf %126 : vector<16x1xf32>
    %128 = math.exp %127 : vector<16x1xf32>
    %cst_52 = arith.constant 1.000000e+00 : f32
    %129 = vector.broadcast %cst_52 : f32 to vector<16x1xf32>
    %130 = arith.addf %129, %128 : vector<16x1xf32>
    %131 = arith.divf %129, %130 : vector<16x1xf32>
    %132 = arith.addf %98, %109 : vector<16x1xf32>
    %133 = vector.broadcast %132 : vector<16x1xf32> to vector<16x32xf32>
    %134 = arith.mulf %133, %82 : vector<16x32xf32>
    %135 = vector.broadcast %120 : vector<16x1xf32> to vector<16x32xf32>
    %136 = arith.mulf %135, %83 : vector<16x32xf32>
    %137 = vector.broadcast %131 : vector<16x1xf32> to vector<16x32xf32>
    %138 = arith.mulf %137, %84 : vector<16x32xf32>
    %139 = arith.addf %136, %138 : vector<16x32xf32>
    %cst_53 = arith.constant dense<0.000000e+00> : vector<8x32xf32>
    %140 = tpu.matmul %12, %134, %cst_53 {dimension_numbers = #tpu.dot_dimension_numbers<[1], [0], [0], [1], [0, 0, 1, 1], [], []>} : vector<8x16xf32>, vector<16x32xf32>, vector<8x32xf32> -> vector<8x32xf32>
    %cst_54 = arith.constant dense<0.000000e+00> : vector<8x96xf32>
    %141 = tpu.matmul %140, %2, %cst_54 {dimension_numbers = #tpu.dot_dimension_numbers<[1], [0], [0], [1], [0, 0, 1, 1], [], []>} : vector<8x32xf32>, vector<32x96xf32>, vector<8x96xf32> -> vector<8x96xf32>
    %142 = vector.broadcast %4 : vector<1x96xf32> to vector<8x96xf32>
    %143 = arith.addf %141, %142 : vector<8x96xf32>
    %cst_55 = arith.constant dense<0.000000e+00> : vector<8x96xf32>
    %144 = tpu.matmul %49, %3, %cst_55 {dimension_numbers = #tpu.dot_dimension_numbers<[1], [0], [0], [1], [0, 0, 1, 1], [], []>} : vector<8x32xf32>, vector<32x96xf32>, vector<8x96xf32> -> vector<8x96xf32>
    %145 = vector.broadcast %5 : vector<1x96xf32> to vector<8x96xf32>
    %146 = arith.addf %144, %145 : vector<8x96xf32>
    %147 = vector.extract_strided_slice %143 {offsets = [0, 0], sizes = [8, 32], strides = [1, 1]} : vector<8x96xf32> to vector<8x32xf32>
    %148 = vector.extract_strided_slice %146 {offsets = [0, 0], sizes = [8, 32], strides = [1, 1]} : vector<8x96xf32> to vector<8x32xf32>
    %149 = arith.addf %147, %148 : vector<8x32xf32>
    %150 = arith.negf %149 : vector<8x32xf32>
    %151 = math.exp %150 : vector<8x32xf32>
    %cst_56 = arith.constant 1.000000e+00 : f32
    %152 = vector.broadcast %cst_56 : f32 to vector<8x32xf32>
    %153 = arith.addf %152, %151 : vector<8x32xf32>
    %154 = arith.divf %152, %153 : vector<8x32xf32>
    %155 = vector.extract_strided_slice %143 {offsets = [0, 32], sizes = [8, 32], strides = [1, 1]} : vector<8x96xf32> to vector<8x32xf32>
    %156 = vector.extract_strided_slice %146 {offsets = [0, 32], sizes = [8, 32], strides = [1, 1]} : vector<8x96xf32> to vector<8x32xf32>
    %157 = arith.addf %155, %156 : vector<8x32xf32>
    %158 = arith.negf %157 : vector<8x32xf32>
    %159 = math.exp %158 : vector<8x32xf32>
    %cst_57 = arith.constant 1.000000e+00 : f32
    %160 = vector.broadcast %cst_57 : f32 to vector<8x32xf32>
    %161 = arith.addf %160, %159 : vector<8x32xf32>
    %162 = arith.divf %160, %161 : vector<8x32xf32>
    %163 = vector.extract_strided_slice %143 {offsets = [0, 64], sizes = [8, 32], strides = [1, 1]} : vector<8x96xf32> to vector<8x32xf32>
    %164 = vector.extract_strided_slice %146 {offsets = [0, 64], sizes = [8, 32], strides = [1, 1]} : vector<8x96xf32> to vector<8x32xf32>
    %165 = arith.mulf %154, %164 : vector<8x32xf32>
    %166 = arith.addf %163, %165 : vector<8x32xf32>
    %167 = math.tanh %166 : vector<8x32xf32>
    %cst_58 = arith.constant 1.000000e+00 : f32
    %168 = vector.broadcast %cst_58 : f32 to vector<8x32xf32>
    %169 = arith.subf %168, %162 : vector<8x32xf32>
    %170 = arith.mulf %169, %167 : vector<8x32xf32>
    %171 = arith.mulf %162, %49 : vector<8x32xf32>
    %172 = arith.addf %170, %171 : vector<8x32xf32>
    %cst_59 = arith.constant dense<0.000000e+00> : vector<16x96xf32>
    %173 = tpu.matmul %139, %6, %cst_59 {dimension_numbers = #tpu.dot_dimension_numbers<[1], [0], [0], [1], [0, 0, 1, 1], [], []>} : vector<16x32xf32>, vector<32x96xf32>, vector<16x96xf32> -> vector<16x96xf32>
    %174 = vector.broadcast %8 : vector<1x96xf32> to vector<16x96xf32>
    %175 = arith.addf %173, %174 : vector<16x96xf32>
    %cst_60 = arith.constant dense<0.000000e+00> : vector<16x96xf32>
    %176 = tpu.matmul %82, %7, %cst_60 {dimension_numbers = #tpu.dot_dimension_numbers<[1], [0], [0], [1], [0, 0, 1, 1], [], []>} : vector<16x32xf32>, vector<32x96xf32>, vector<16x96xf32> -> vector<16x96xf32>
    %177 = vector.broadcast %9 : vector<1x96xf32> to vector<16x96xf32>
    %178 = arith.addf %176, %177 : vector<16x96xf32>
    %179 = vector.extract_strided_slice %175 {offsets = [0, 0], sizes = [16, 32], strides = [1, 1]} : vector<16x96xf32> to vector<16x32xf32>
    %180 = vector.extract_strided_slice %178 {offsets = [0, 0], sizes = [16, 32], strides = [1, 1]} : vector<16x96xf32> to vector<16x32xf32>
    %181 = arith.addf %179, %180 : vector<16x32xf32>
    %182 = arith.negf %181 : vector<16x32xf32>
    %183 = math.exp %182 : vector<16x32xf32>
    %cst_61 = arith.constant 1.000000e+00 : f32
    %184 = vector.broadcast %cst_61 : f32 to vector<16x32xf32>
    %185 = arith.addf %184, %183 : vector<16x32xf32>
    %186 = arith.divf %184, %185 : vector<16x32xf32>
    %187 = vector.extract_strided_slice %175 {offsets = [0, 32], sizes = [16, 32], strides = [1, 1]} : vector<16x96xf32> to vector<16x32xf32>
    %188 = vector.extract_strided_slice %178 {offsets = [0, 32], sizes = [16, 32], strides = [1, 1]} : vector<16x96xf32> to vector<16x32xf32>
    %189 = arith.addf %187, %188 : vector<16x32xf32>
    %190 = arith.negf %189 : vector<16x32xf32>
    %191 = math.exp %190 : vector<16x32xf32>
    %cst_62 = arith.constant 1.000000e+00 : f32
    %192 = vector.broadcast %cst_62 : f32 to vector<16x32xf32>
    %193 = arith.addf %192, %191 : vector<16x32xf32>
    %194 = arith.divf %192, %193 : vector<16x32xf32>
    %195 = vector.extract_strided_slice %175 {offsets = [0, 64], sizes = [16, 32], strides = [1, 1]} : vector<16x96xf32> to vector<16x32xf32>
    %196 = vector.extract_strided_slice %178 {offsets = [0, 64], sizes = [16, 32], strides = [1, 1]} : vector<16x96xf32> to vector<16x32xf32>
    %197 = arith.mulf %186, %196 : vector<16x32xf32>
    %198 = arith.addf %195, %197 : vector<16x32xf32>
    %199 = math.tanh %198 : vector<16x32xf32>
    %cst_63 = arith.constant 1.000000e+00 : f32
    %200 = vector.broadcast %cst_63 : f32 to vector<16x32xf32>
    %201 = arith.subf %200, %194 : vector<16x32xf32>
    %202 = arith.mulf %201, %199 : vector<16x32xf32>
    %203 = arith.mulf %194, %82 : vector<16x32xf32>
    %204 = arith.addf %202, %203 : vector<16x32xf32>
    %cst_64 = arith.constant dense<0.000000e+00> : vector<16x32xf32>
    %205 = tpu.matmul %10, %172, %cst_64 {dimension_numbers = #tpu.dot_dimension_numbers<[1], [0], [0], [1], [0, 0, 1, 1], [], []>} : vector<16x8xf32>, vector<8x32xf32>, vector<16x32xf32> -> vector<16x32xf32>
    %cst_65 = arith.constant dense<0.000000e+00> : vector<16x32xf32>
    %206 = tpu.matmul %11, %172, %cst_65 {dimension_numbers = #tpu.dot_dimension_numbers<[1], [0], [0], [1], [0, 0, 1, 1], [], []>} : vector<16x8xf32>, vector<8x32xf32>, vector<16x32xf32> -> vector<16x32xf32>
    %cst_66 = arith.constant dense<0.000000e+00> : vector<16x2xf32>
    %207 = tpu.matmul %205, %13, %cst_66 {dimension_numbers = #tpu.dot_dimension_numbers<[1], [0], [0], [1], [0, 0, 1, 1], [], []>} : vector<16x32xf32>, vector<32x2xf32>, vector<16x2xf32> -> vector<16x2xf32>
    %cst_67 = arith.constant dense<0.000000e+00> : vector<16x2xf32>
    %208 = tpu.matmul %206, %14, %cst_67 {dimension_numbers = #tpu.dot_dimension_numbers<[1], [0], [0], [1], [0, 0, 1, 1], [], []>} : vector<16x32xf32>, vector<32x2xf32>, vector<16x2xf32> -> vector<16x2xf32>
    %cst_68 = arith.constant dense<0.000000e+00> : vector<16x4xf32>
    %209 = tpu.matmul %204, %15, %cst_68 {dimension_numbers = #tpu.dot_dimension_numbers<[1], [0], [0], [1], [0, 0, 1, 1], [], []>} : vector<16x32xf32>, vector<32x4xf32>, vector<16x4xf32> -> vector<16x4xf32>
    %210 = vector.extract_strided_slice %207 {offsets = [0, 0], sizes = [16, 1], strides = [1, 1]} : vector<16x2xf32> to vector<16x1xf32>
    %211 = vector.extract_strided_slice %209 {offsets = [0, 0], sizes = [16, 1], strides = [1, 1]} : vector<16x4xf32> to vector<16x1xf32>
    %212 = arith.addf %210, %211 : vector<16x1xf32>
    %213 = vector.extract_strided_slice %16 {offsets = [0, 0], sizes = [1, 1], strides = [1, 1]} : vector<1x4xf32> to vector<1x1xf32>
    %214 = vector.broadcast %213 : vector<1x1xf32> to vector<16x1xf32>
    %215 = arith.addf %212, %214 : vector<16x1xf32>
    %216 = arith.negf %215 : vector<16x1xf32>
    %217 = math.exp %216 : vector<16x1xf32>
    %cst_69 = arith.constant 1.000000e+00 : f32
    %218 = vector.broadcast %cst_69 : f32 to vector<16x1xf32>
    %219 = arith.addf %218, %217 : vector<16x1xf32>
    %220 = arith.divf %218, %219 : vector<16x1xf32>
    %221 = vector.extract_strided_slice %208 {offsets = [0, 0], sizes = [16, 1], strides = [1, 1]} : vector<16x2xf32> to vector<16x1xf32>
    %222 = vector.extract_strided_slice %209 {offsets = [0, 1], sizes = [16, 1], strides = [1, 1]} : vector<16x4xf32> to vector<16x1xf32>
    %223 = arith.addf %221, %222 : vector<16x1xf32>
    %224 = vector.extract_strided_slice %16 {offsets = [0, 1], sizes = [1, 1], strides = [1, 1]} : vector<1x4xf32> to vector<1x1xf32>
    %225 = vector.broadcast %224 : vector<1x1xf32> to vector<16x1xf32>
    %226 = arith.addf %223, %225 : vector<16x1xf32>
    %227 = arith.negf %226 : vector<16x1xf32>
    %228 = math.exp %227 : vector<16x1xf32>
    %cst_70 = arith.constant 1.000000e+00 : f32
    %229 = vector.broadcast %cst_70 : f32 to vector<16x1xf32>
    %230 = arith.addf %229, %228 : vector<16x1xf32>
    %231 = arith.divf %229, %230 : vector<16x1xf32>
    %232 = vector.extract_strided_slice %207 {offsets = [0, 1], sizes = [16, 1], strides = [1, 1]} : vector<16x2xf32> to vector<16x1xf32>
    %233 = vector.extract_strided_slice %209 {offsets = [0, 2], sizes = [16, 1], strides = [1, 1]} : vector<16x4xf32> to vector<16x1xf32>
    %234 = arith.addf %232, %233 : vector<16x1xf32>
    %235 = vector.extract_strided_slice %16 {offsets = [0, 2], sizes = [1, 1], strides = [1, 1]} : vector<1x4xf32> to vector<1x1xf32>
    %236 = vector.broadcast %235 : vector<1x1xf32> to vector<16x1xf32>
    %237 = arith.addf %234, %236 : vector<16x1xf32>
    %238 = arith.negf %237 : vector<16x1xf32>
    %239 = math.exp %238 : vector<16x1xf32>
    %cst_71 = arith.constant 1.000000e+00 : f32
    %240 = vector.broadcast %cst_71 : f32 to vector<16x1xf32>
    %241 = arith.addf %240, %239 : vector<16x1xf32>
    %242 = arith.divf %240, %241 : vector<16x1xf32>
    %243 = vector.extract_strided_slice %208 {offsets = [0, 1], sizes = [16, 1], strides = [1, 1]} : vector<16x2xf32> to vector<16x1xf32>
    %244 = vector.extract_strided_slice %209 {offsets = [0, 3], sizes = [16, 1], strides = [1, 1]} : vector<16x4xf32> to vector<16x1xf32>
    %245 = arith.addf %243, %244 : vector<16x1xf32>
    %246 = vector.extract_strided_slice %16 {offsets = [0, 3], sizes = [1, 1], strides = [1, 1]} : vector<1x4xf32> to vector<1x1xf32>
    %247 = vector.broadcast %246 : vector<1x1xf32> to vector<16x1xf32>
    %248 = arith.addf %245, %247 : vector<16x1xf32>
    %249 = arith.negf %248 : vector<16x1xf32>
    %250 = math.exp %249 : vector<16x1xf32>
    %cst_72 = arith.constant 1.000000e+00 : f32
    %251 = vector.broadcast %cst_72 : f32 to vector<16x1xf32>
    %252 = arith.addf %251, %250 : vector<16x1xf32>
    %253 = arith.divf %251, %252 : vector<16x1xf32>
    %254 = arith.addf %220, %231 : vector<16x1xf32>
    %255 = vector.broadcast %254 : vector<16x1xf32> to vector<16x32xf32>
    %256 = arith.mulf %255, %204 : vector<16x32xf32>
    %257 = vector.broadcast %242 : vector<16x1xf32> to vector<16x32xf32>
    %258 = arith.mulf %257, %205 : vector<16x32xf32>
    %259 = vector.broadcast %253 : vector<16x1xf32> to vector<16x32xf32>
    %260 = arith.mulf %259, %206 : vector<16x32xf32>
    %261 = arith.addf %258, %260 : vector<16x32xf32>
    %cst_73 = arith.constant dense<0.000000e+00> : vector<8x32xf32>
    %262 = tpu.matmul %12, %256, %cst_73 {dimension_numbers = #tpu.dot_dimension_numbers<[1], [0], [0], [1], [0, 0, 1, 1], [], []>} : vector<8x16xf32>, vector<16x32xf32>, vector<8x32xf32> -> vector<8x32xf32>
    %cst_74 = arith.constant dense<0.000000e+00> : vector<8x96xf32>
    %263 = tpu.matmul %262, %2, %cst_74 {dimension_numbers = #tpu.dot_dimension_numbers<[1], [0], [0], [1], [0, 0, 1, 1], [], []>} : vector<8x32xf32>, vector<32x96xf32>, vector<8x96xf32> -> vector<8x96xf32>
    %264 = vector.broadcast %4 : vector<1x96xf32> to vector<8x96xf32>
    %265 = arith.addf %263, %264 : vector<8x96xf32>
    %cst_75 = arith.constant dense<0.000000e+00> : vector<8x96xf32>
    %266 = tpu.matmul %172, %3, %cst_75 {dimension_numbers = #tpu.dot_dimension_numbers<[1], [0], [0], [1], [0, 0, 1, 1], [], []>} : vector<8x32xf32>, vector<32x96xf32>, vector<8x96xf32> -> vector<8x96xf32>
    %267 = vector.broadcast %5 : vector<1x96xf32> to vector<8x96xf32>
    %268 = arith.addf %266, %267 : vector<8x96xf32>
    %269 = vector.extract_strided_slice %265 {offsets = [0, 0], sizes = [8, 32], strides = [1, 1]} : vector<8x96xf32> to vector<8x32xf32>
    %270 = vector.extract_strided_slice %268 {offsets = [0, 0], sizes = [8, 32], strides = [1, 1]} : vector<8x96xf32> to vector<8x32xf32>
    %271 = arith.addf %269, %270 : vector<8x32xf32>
    %272 = arith.negf %271 : vector<8x32xf32>
    %273 = math.exp %272 : vector<8x32xf32>
    %cst_76 = arith.constant 1.000000e+00 : f32
    %274 = vector.broadcast %cst_76 : f32 to vector<8x32xf32>
    %275 = arith.addf %274, %273 : vector<8x32xf32>
    %276 = arith.divf %274, %275 : vector<8x32xf32>
    %277 = vector.extract_strided_slice %265 {offsets = [0, 32], sizes = [8, 32], strides = [1, 1]} : vector<8x96xf32> to vector<8x32xf32>
    %278 = vector.extract_strided_slice %268 {offsets = [0, 32], sizes = [8, 32], strides = [1, 1]} : vector<8x96xf32> to vector<8x32xf32>
    %279 = arith.addf %277, %278 : vector<8x32xf32>
    %280 = arith.negf %279 : vector<8x32xf32>
    %281 = math.exp %280 : vector<8x32xf32>
    %cst_77 = arith.constant 1.000000e+00 : f32
    %282 = vector.broadcast %cst_77 : f32 to vector<8x32xf32>
    %283 = arith.addf %282, %281 : vector<8x32xf32>
    %284 = arith.divf %282, %283 : vector<8x32xf32>
    %285 = vector.extract_strided_slice %265 {offsets = [0, 64], sizes = [8, 32], strides = [1, 1]} : vector<8x96xf32> to vector<8x32xf32>
    %286 = vector.extract_strided_slice %268 {offsets = [0, 64], sizes = [8, 32], strides = [1, 1]} : vector<8x96xf32> to vector<8x32xf32>
    %287 = arith.mulf %276, %286 : vector<8x32xf32>
    %288 = arith.addf %285, %287 : vector<8x32xf32>
    %289 = math.tanh %288 : vector<8x32xf32>
    %cst_78 = arith.constant 1.000000e+00 : f32
    %290 = vector.broadcast %cst_78 : f32 to vector<8x32xf32>
    %291 = arith.subf %290, %284 : vector<8x32xf32>
    %292 = arith.mulf %291, %289 : vector<8x32xf32>
    %293 = arith.mulf %284, %172 : vector<8x32xf32>
    %294 = arith.addf %292, %293 : vector<8x32xf32>
    %cst_79 = arith.constant dense<0.000000e+00> : vector<16x96xf32>
    %295 = tpu.matmul %261, %6, %cst_79 {dimension_numbers = #tpu.dot_dimension_numbers<[1], [0], [0], [1], [0, 0, 1, 1], [], []>} : vector<16x32xf32>, vector<32x96xf32>, vector<16x96xf32> -> vector<16x96xf32>
    %296 = vector.broadcast %8 : vector<1x96xf32> to vector<16x96xf32>
    %297 = arith.addf %295, %296 : vector<16x96xf32>
    %cst_80 = arith.constant dense<0.000000e+00> : vector<16x96xf32>
    %298 = tpu.matmul %204, %7, %cst_80 {dimension_numbers = #tpu.dot_dimension_numbers<[1], [0], [0], [1], [0, 0, 1, 1], [], []>} : vector<16x32xf32>, vector<32x96xf32>, vector<16x96xf32> -> vector<16x96xf32>
    %299 = vector.broadcast %9 : vector<1x96xf32> to vector<16x96xf32>
    %300 = arith.addf %298, %299 : vector<16x96xf32>
    %301 = vector.extract_strided_slice %297 {offsets = [0, 0], sizes = [16, 32], strides = [1, 1]} : vector<16x96xf32> to vector<16x32xf32>
    %302 = vector.extract_strided_slice %300 {offsets = [0, 0], sizes = [16, 32], strides = [1, 1]} : vector<16x96xf32> to vector<16x32xf32>
    %303 = arith.addf %301, %302 : vector<16x32xf32>
    %304 = arith.negf %303 : vector<16x32xf32>
    %305 = math.exp %304 : vector<16x32xf32>
    %cst_81 = arith.constant 1.000000e+00 : f32
    %306 = vector.broadcast %cst_81 : f32 to vector<16x32xf32>
    %307 = arith.addf %306, %305 : vector<16x32xf32>
    %308 = arith.divf %306, %307 : vector<16x32xf32>
    %309 = vector.extract_strided_slice %297 {offsets = [0, 32], sizes = [16, 32], strides = [1, 1]} : vector<16x96xf32> to vector<16x32xf32>
    %310 = vector.extract_strided_slice %300 {offsets = [0, 32], sizes = [16, 32], strides = [1, 1]} : vector<16x96xf32> to vector<16x32xf32>
    %311 = arith.addf %309, %310 : vector<16x32xf32>
    %312 = arith.negf %311 : vector<16x32xf32>
    %313 = math.exp %312 : vector<16x32xf32>
    %cst_82 = arith.constant 1.000000e+00 : f32
    %314 = vector.broadcast %cst_82 : f32 to vector<16x32xf32>
    %315 = arith.addf %314, %313 : vector<16x32xf32>
    %316 = arith.divf %314, %315 : vector<16x32xf32>
    %317 = vector.extract_strided_slice %297 {offsets = [0, 64], sizes = [16, 32], strides = [1, 1]} : vector<16x96xf32> to vector<16x32xf32>
    %318 = vector.extract_strided_slice %300 {offsets = [0, 64], sizes = [16, 32], strides = [1, 1]} : vector<16x96xf32> to vector<16x32xf32>
    %319 = arith.mulf %308, %318 : vector<16x32xf32>
    %320 = arith.addf %317, %319 : vector<16x32xf32>
    %321 = math.tanh %320 : vector<16x32xf32>
    %cst_83 = arith.constant 1.000000e+00 : f32
    %322 = vector.broadcast %cst_83 : f32 to vector<16x32xf32>
    %323 = arith.subf %322, %316 : vector<16x32xf32>
    %324 = arith.mulf %323, %321 : vector<16x32xf32>
    %325 = arith.mulf %316, %204 : vector<16x32xf32>
    %326 = arith.addf %324, %325 : vector<16x32xf32>
    %c0_84 = arith.constant 0 : index
    %c0_85 = arith.constant 0 : index
    %327 = vector.load %arg17[%c0_84, %c0_85] : memref<8x32xf32, #tpu.memory_space<vmem>>, vector<8x32xf32>
    tpu.vector_store %arg17[%c0_84, %c0_85], %294 {strides = array<i32>} : memref<8x32xf32, #tpu.memory_space<vmem>>, vector<8x32xf32>,
    %c0_86 = arith.constant 0 : index
    %c0_87 = arith.constant 0 : index
    %328 = vector.load %arg18[%c0_86, %c0_87] : memref<16x32xf32, #tpu.memory_space<vmem>>, vector<16x32xf32>
    tpu.vector_store %arg18[%c0_86, %c0_87], %326 {strides = array<i32>} : memref<16x32xf32, #tpu.memory_space<vmem>>, vector<16x32xf32>,
    return
  }
}

</mosaic_0001>

<bundles_post_ra>
// kernel: triplet_imp_forward.1
= control target key start
LH: loop header
LB: loop body
LE: loop exit
PB: predicated region body
PF: predicated region fallthrough
CT: control target
= control target key end

     0   :  { %s3957_s0 = inlined_call_operand.vmem [shape: f32[8,32], index: 0, kind: input, shape index: {}]   ;;  %s3958_s1 = inlined_call_operand.vmem [shape: f32[16,32], index: 1, kind: input, shape index: {}]   ;;  %s3959_s2 = inlined_call_operand.vmem [shape: f32[16,8], index: 2, kind: input, shape index: {}]   ;;  %s3960_s3 = inlined_call_operand.vmem [shape: f32[16,8], index: 3, kind: input, shape index: {}]   ;;  %s3961_s4 = inlined_call_operand.vmem [shape: f32[8,16], index: 4, kind: input, shape index: {}]   ;;  %s3962_s5 = inlined_call_operand.vmem [shape: f32[32,96], index: 5, kind: input, shape index: {}]   ;;  %s3963_s6 = inlined_call_operand.vmem [shape: f32[32,96], index: 6, kind: input, shape index: {}]   ;;  %s3964_s7 = inlined_call_operand.vmem [shape: f32[1,96], index: 7, kind: input, shape index: {}]   ;;  %s3965_s8 = inlined_call_operand.vmem [shape: f32[1,96], index: 8, kind: input, shape index: {}]   ;;  %s3966_s9 = inlined_call_operand.vmem [shape: f32[32,96], index: 9, kind: input, shape index: {}]   ;;  %s3967_s10 = inlined_call_operand.vmem [shape: f32[32,96], index: 10, kind: input, shape index: {}]   ;;  %s3968_s11 = inlined_call_operand.vmem [shape: f32[1,96], index: 11, kind: input, shape index: {}]   ;;  %s3969_s12 = inlined_call_operand.vmem [shape: f32[1,96], index: 12, kind: input, shape index: {}]   ;;  %s3970_s13 = inlined_call_operand.vmem [shape: f32[32,2], index: 13, kind: input, shape index: {}]   ;;  %s3971_s14 = inlined_call_operand.vmem [shape: f32[32,2], index: 14, kind: input, shape index: {}]   ;;  %s3972_s15 = inlined_call_operand.vmem [shape: f32[32,4], index: 15, kind: input, shape index: {}]   ;;  %s3973_s16 = inlined_call_operand.vmem [shape: f32[1,4], index: 16, kind: input, shape index: {}]   ;;  %s3974_s17 = inlined_call_operand.hbm [shape: f32[8,32], index: 17, kind: output, shape index: {0}]   ;;  %s3975_s18 = inlined_call_operand.hbm [shape: f32[16,32], index: 18, kind: output, shape index: {1}]  }
   0x1   :  { %3978 = sst [smem:[#allocation8_spill]] %s3957_s0 }
   0x2   :  { %3979 = sst [smem:[#allocation9_spill]] %s3958_s1 }
   0x3   :  { %3980 = sst [smem:[#allocation10_spill]] %s3959_s2 }
   0x4   :  { %24 = vsyncpa [#allocation3], 0  ;;  %v63_v0 = vld [vmem:[%s3962_s5] sm:$0xff]  ;;  %v64_v1 = vld [vmem:[%s3962_s5 + $0x8] sm:$0xff]  ;;  %v3290_v3 = vmov 0.0|0.0   ;;  %vm3291_vm0 = vmmov 0  }
   0x5   :  { %v67_v2 = vld [vmem:[%s3963_s6] sm:$0xff]  ;;  %2951 = vmatprep.subr.bf16.mxu0 %v3290_v3  ;;  %2957 = vmatprep.subr.bf16.mxu1 %v3290_v3  ;;  %v3409_v4 = vpack.c.bf16 %v64_v1, %v63_v0  ;;  %v68_v5 = vld [vmem:[%s3963_s6 + $0x8] sm:$0xff]  ;;  %v65_v6 = vld [vmem:[%s3962_s5 + $0x10] sm:$0xff]  ;;  %v3292_v11 = vmov 0.0  }
   0x6   :  { %v66_v7 = vld [vmem:[%s3962_s5 + $0x18] sm:$0xff]  ;;  %v3420_v8 = vpack.c.bf16 %v68_v5, %v67_v2  ;;  %v69_v9 = vld [vmem:[%s3963_s6 + $0x10] sm:$0xff]  ;;  %2727 = vmatprep.mubr.msk.f32.mxu0 %vm3291_vm0, %v3292_v11  ;;  %2738 = vmatprep.mubr.msk.f32.mxu1 %vm3291_vm0, %v3292_v11  ;;  %v77_v13 = vld [vmem:[%s3967_s10] sm:$0xff] }
   0x7   :  { %v70_v10 = vld [vmem:[%s3963_s6 + $0x18] sm:$0xff]  ;;  %2953 = vmatpush3.bf16.msra.mxu0 %v3409_v4  ;;  %v3433_v12 = vpack.c.bf16 %v66_v7, %v65_v6  ;;  %v78_v14 = vld [vmem:[%s3967_s10 + $0x8] sm:$0xff]  ;;  %v73_v16 = vld [vmem:[%s3966_s9] sm:$0xff] }
   0x8   :  { %2959 = vmatpush3.bf16.msra.mxu1 %v3420_v8  ;;  %2954 = vmatprep.subr.bf16.mxu0 %v3290_v3  ;;  %v3443_v15 = vpack.c.bf16 %v70_v10, %v69_v9  ;;  %v74_v17 = vld [vmem:[%s3966_s9 + $0x8] sm:$0xff]  ;;  %v3452_v18 = vpack.c.bf16 %v78_v14, %v77_v13  ;;  %v79_v19 = vld [vmem:[%s3967_s10 + $0x10] sm:$0xff]  ;;  %v80_v20 = vld [vmem:[%s3967_s10 + $0x18] sm:$0xff] }
   0x9   :  { %2960 = vmatprep.subr.bf16.mxu1 %v3290_v3  ;;  %v3460_v21 = vpack.c.bf16 %v74_v17, %v73_v16  ;;  %v75_v22 = vld [vmem:[%s3966_s9 + $0x10] sm:$0xff]  ;;  %v76_v23 = vld [vmem:[%s3966_s9 + $0x18] sm:$0xff] }
   0xa   :  { %25 = vsyncpa [#allocation5], 0  ;;  %s3981_s28 = sld [smem:[#allocation8_spill]]  ;;  %vm107_vm1 = vcmask 261120   ;;  %v3475_v25 = vpack.c.bf16 %v80_v20, %v79_v19  ;;  %v3477_v26 = vpack.c.bf16 %v76_v23, %v75_v22  ;;  %s3982_s29 = sld [smem:[#allocation9_spill]]  ;;  %vm510_vm2 = vcmask 64512  }
   0xb   :  { %2956 = vmatpush3.bf16.msra.mxu0 %v3433_v12  ;;  %v3500_v29 = vld [vmem:[%s3965_s8] ss:$0 sm:$0xff]  ;;  %s3293_s1 = smov 64   ;;  %s3294_s25 = smov 96   ;;  %vm1058_vm3 = vcmask 130048  }
   0xc   :  { %2962 = vmatpush3.bf16.msra.mxu1 %v3443_v15  ;;  %2964 = vmatprep.subr.bf16.mxu0 %v3460_v21  ;;  %v3507_v39 = vld [vmem:[%s3964_s7] ss:$0 sm:$0xff]  ;;  %s3983_s5 = sld [smem:[#allocation10_spill]] }
   0xd   :  { %2972 = vmatprep.subr.bf16.mxu1 %v3452_v18  ;;  %v3513_v47 = vld [vmem:[%s3969_s12] ss:$0 sm:$0xff] }
   0xe   :  { %v3521_v50 = vld [vmem:[%s3968_s11] ss:$0 sm:$0xff] }
   0xf   :  { %2739 = vmatmul.mubr.f32.vlgmr.msra.gmra.mrb[0].mxu1 %v3292_v11 }
  0x10   :  { %v60_v24 = vld [vmem:[%s3981_s28] sm:$0xff]  ;;  %2974 = vmatpush3.bf16.msra.mxu1 %v3452_v18  ;;  %2760 = vmatprep.mubr.f32.mxu1 %v3292_v11  ;;  %v62_v28 = vld [vmem:[%s3982_s29 + $0x8] sm:$0xff] }
  0x11   :  { %2728 = vmatmul.mubr.msk.f32.vlgmr.msra.gmra.mrb[0].mxu0 %vm107_vm1, %v60_v24  ;;  %v61_v27 = vld [vmem:[%s3982_s29] sm:$0xff]  ;;  %2976 = vmatprep.subr.bf16.mxu1 %v3475_v25 }
  0x12   :  { %2966 = vmatpush3.bf16.msra.mxu0 %v3460_v21  ;;  %2749 = vmatprep.mubr.msk.f32.mxu0 %vm107_vm1, %v61_v27  ;;  %v3529_v62 = vld [vmem:[%s3983_s5] sm:$0xff]  ;;  %v3546_v22 = vld [vmem:[%s3983_s5 + $0x8] sm:$0xff] }
  0x13   :  { %2968 = vmatprep.subr.bf16.mxu0 %v3477_v26 }
  0x14   :  { %2978 = vmatpush3.bf16.msra.mxu1 %v3475_v25 }
  0x16   :  { %2970 = vmatpush3.bf16.msra.mxu0 %v3477_v26 }
  0x17   :  { %2761 = vmatmul.mubr.f32.vlgmr.msra.gmra.mrb[2].mxu1 %v3292_v11 }
  0x19   :  { %2750 = vmatmul.mubr.msk.f32.vlgmr.msra.gmra.mrb[2].mxu0 %vm107_vm1, %v62_v28 }
  0x1a   :  { %2765 = vmatprep.mubr.msk.f32.mxu0 %vm510_vm2, %v3529_v62 }
  0xe2   :  { %v256_v31 = vpop.f32.mrb[0].mxu1 }
  0xe3   :  { %v257_v33 = vadd.f32 %v3500_v29, %v256_v31  ;;  %v2740_v34 = vpop.f32.mrb[1].mxu1 }
  0xe4   :  { %v177_v30 = vpop.f32.mrb[0].mxu0  ;;  %v88_v34 = vld [vmem:[%s3970_s13] sm:$0xff] }
  0xe5   :  { %v2729_v32 = vpop.f32.mrb[1].mxu0  ;;  %268 = vrot.lane.b32.xlu0 %v257_v33, %s3293_s1  ;;  %v178_v40 = vadd.f32 %v3507_v39, %v177_v30 }
  0xe7   :  { %v260_v41 = vadd.f32 %v257_v33, %v178_v40 }
  0xe9   :  { %v2535_v42 = vmul.f32 -1.442695, %v260_v41 }
  0xea   :  { %v2762_v36 = vpop.f32.mrb[2].mxu1 }
  0xeb   :  { %v445_v38 = vpop.f32.mrb[3].mxu1  ;;  %3120 = vpow2.f32 %v2535_v42  ;;  %v451_v10 = vadd.f32 %v2762_v36, %v3513_v47 }
  0xec   :  { %v2751_v35 = vpop.f32.mrb[2].mxu0  ;;  %v446_v49 = vadd.f32 %v3513_v47, %v445_v38  ;;  %v91_v38 = vld [vmem:[%s3970_s13 + $0x18] sm:$0xff] }
  0xed   :  { %v364_v37 = vpop.f32.mrb[3].mxu0  ;;  %v370_v13 = vadd.f32 %v2751_v35, %v3521_v50  ;;  %v89_v35 = vld [vmem:[%s3970_s13 + $0x8] sm:$0xff] }
  0xee   :  { %v365_v51 = vadd.f32 %v3521_v50, %v364_v37  ;;  %v3565_v36 = vpack.c.bf16 %v89_v35, %v88_v34  ;;  %v90_v37 = vld [vmem:[%s3970_s13 + $0x10] sm:$0xff] }
  0xef   :  { %v455_v14 = vadd.f32 %v451_v10, %v370_v13 }
  0xf0   :  { %v454_v52 = vadd.f32 %v446_v49, %v365_v51 }
  0xf1   :  { %v2541_v16 = vmul.f32 -1.442695, %v455_v14 }
  0xf2   :  { %v2540_v53 = vmul.f32 -1.442695, %v454_v52  ;;  %v99_v52 = vld [vmem:[%s3972_s15 + $0x18] sm:$0xff] }
  0xf5   :  { %v3121_v43 = vpop.eup %3120 }
  0xf6   :  { %v264_v44 = vadd.f32 1.0, %v3121_v43  ;;  %v85_v43 = vld [vmem:[%s3960_s3] sm:$0xff] }
  0xf7   :  { %2770 = vmatprep.mubr.msk.f32.mxu1 %vm510_vm2, %v85_v43 }
  0xf8   :  { %3122 = vrcp.f32 %v264_v44  ;;  %v3585_v44 = vld [vmem:[%s3960_s3 + $0x8] sm:$0xff] }
  0xf9   :  { %3124 = vpow2.f32 %v2540_v53 }
 0x102   :  { %v3123_v45 = vpop.eup %3122 }
 0x103   :  { %v3125_v54 = vpop.eup %3124  ;;  %v278_v1 = vsub.f32 1.0, %v3123_v45  ;;  %v284_v5 = vmul.f32 0.0, %v3123_v45 }
 0x104   :  { %v462_v55 = vadd.f32 1.0, %v3125_v54 }
 0x106   :  { %3126 = vrcp.f32 %v462_v55 }
 0x110   :  { %v3127_v58 = vpop.eup %3126 }
 0x111   :  { %v490_v23 = vsub.f32 1.0, %v3127_v58  ;;  %v502_v27 = vmul.f32 0.0, %v3127_v58 }
 0x157   :  { %v269_v46 = vpop.permute.xlu0 %268 }
 0x158   :  { %v271_v48 = vmul.f32 %v3123_v45, %v269_v46  ;;  %v96_v45 = vld [vmem:[%s3972_s15] sm:$0xff]  ;;  %v97_v46 = vld [vmem:[%s3972_s15 + $0x8] sm:$0xff] }
 0x15a   :  { %273 = vrot.lane.b32.xlu0 %v271_v48, %s3293_s1  ;;  %v3596_v48 = vpack.c.bf16 %v97_v46, %v96_v45 }
 0x15e   :  { %470 = vrot.lane.b32.xlu0 %v446_v49, %s3293_s1 }
 0x1cc   :  { %v274_v56 = vpop.permute.xlu0 %273 }
 0x1cd   :  { %v276_v57 = vadd.f32 %v274_v56, %v178_v40  ;;  %v3573_v40 = vpack.c.bf16 %v91_v38, %v90_v37 }
 0x1cf   :  { %3128 = vtanh.f32 %v276_v57 }
 0x1d0   :  { %v471_v59 = vpop.permute.xlu0 %470 }
 0x1d1   :  { %v476_v60 = vmul.f32 %v3127_v58, %v471_v59 }
 0x1d3   :  { %480 = vrot.lane.b32.xlu0 %v476_v60, %s3293_s1 }
 0x1d9   :  { %v3129_v61 = vpop.eup %3128 }
 0x1da   :  { %280 = vrot.lane.b32.xlu1 %v3129_v61, %s3294_s25 }
 0x245   :  { %v481_v63 = vpop.permute.xlu0 %480 }
 0x246   :  { %v486_v0 = vadd.f32 %v481_v63, %v365_v51  ;;  %v98_v51 = vld [vmem:[%s3972_s15 + $0x10] sm:$0xff]  ;;  %v92_v63 = vld [vmem:[%s3971_s14] sm:$0xff] }
 0x247   :  { %v3610_v55 = vpack.c.bf16 %v99_v52, %v98_v51 }
 0x248   :  { %3130 = vtanh.f32 %v486_v0  ;;  %v93_v0 = vld [vmem:[%s3971_s14 + $0x8] sm:$0xff] }
 0x249   :  { %3132 = vpow2.f32 %v2541_v16 }
 0x24c   :  { %v281_v2 = vpop.permute.xlu1 %280 }
 0x24d   :  { %v283_v6 = vmul.f32 %v281_v2, %v278_v1  ;;  %v94_v1 = vld [vmem:[%s3971_s14 + $0x10] sm:$0xff]  ;;  %v3634_v2 = vpack.c.bf16 %v93_v0, %v92_v63 }
 0x24f   :  { %v3533_v7 = vadd.f32 %v284_v5, %v283_v6  ;;  %v95_v5 = vld [vmem:[%s3971_s14 + $0x18] sm:$0xff]  ;;  %s3295_s14 = smov 127  }
 0x250   :  { %v3639_v6 = vpack.c.bf16 %v95_v5, %v94_v1 }
 0x251   :  { %507 = vrot.lane.b32.xlu1 %v3533_v7, %s3294_s25 }
 0x252   :  { %v3131_v9 = vpop.eup %3130 }
 0x253   :  { %494 = vrot.lane.b32.xlu0 %v3131_v9, %s3294_s25  ;;  %v3133_v17 = vpop.eup %3132 }
 0x254   :  { %v463_v19 = vadd.f32 1.0, %v3133_v17 }
 0x255   :  { %472 = vrot.lane.b32.xlu1 %v451_v10, %s3293_s1 }
 0x256   :  { %3134 = vrcp.f32 %v463_v19 }
 0x260   :  { %v3135_v30 = vpop.eup %3134 }
 0x261   :  { %v491_v57 = vsub.f32 1.0, %v3135_v30  ;;  %v503_v59 = vmul.f32 0.0, %v3135_v30 }
 0x2c3   :  { %v3541_v20 = vpop.permute.xlu1 %507 }
 0x2c4   :  { %2763 = vmatprep.subr.mxu0 %v3541_v20  ;;  %2768 = vmatprep.subr.mxu1 %v3541_v20 }
 0x2c5   :  { %2764 = vmatpush3.msra.mxu0 %v3541_v20  ;;  %2769 = vmatpush3.msra.mxu1 %v3541_v20  ;;  %v495_v24 = vpop.permute.xlu0 %494 }
 0x2c6   :  { %v500_v28 = vmul.f32 %v495_v24, %v490_v23  ;;  %2766 = vmatmul.mubr.msk.f32.vlgmr.msra.gmra.mrb[4].mxu0 %vm510_vm2, %v3546_v22  ;;  %2980 = vmatprep.subr.bf16.mxu0 %v3565_v36 }
 0x2c7   :  { %v473_v31 = vpop.permute.xlu1 %472  ;;  %2982 = vmatpush3.bf16.msra.mxu0 %v3565_v36  ;;  %2771 = vmatmul.mubr.msk.f32.vlgmr.msra.gmra.mrb[4].mxu1 %vm510_vm2, %v3585_v44 }
 0x2c8   :  { %v3554_v32 = vadd.f32 %v502_v27, %v500_v28  ;;  %v477_v33 = vmul.f32 %v3135_v30, %v473_v31  ;;  %2984 = vmatprep.subr.bf16.mxu0 %v3573_v40  ;;  %2988 = vmatprep.subr.bf16.mxu1 %v3634_v2  ;;  %v3687_v28 = vld [vmem:[%s3973_s16] ss:$0 sm:$0xff]  ;;  %s3297_s16 = smov 126  }
 0x2c9   :  { %2990 = vmatpush3.bf16.msra.mxu1 %v3634_v2 }
 0x2ca   :  { %482 = vrot.lane.b32.xlu1 %v477_v33, %s3293_s1  ;;  %837 = vrot.lane.b32.xlu0 %v3554_v32, %s3294_s25  ;;  %v3296_v33 = vmov 0  }
 0x2cb   :  { %2986 = vmatpush3.bf16.msra.mxu0 %v3573_v40  ;;  %2992 = vmatprep.subr.bf16.mxu1 %v3639_v6 }
 0x2cc   :  { %2996 = vmatprep.subr.bf16.mxu0 %v3596_v48  ;;  %3103 = vset.pattern.permute.xlu0 %v3296_v33 }
 0x2cd   :  { %2994 = vmatpush3.bf16.msra.mxu1 %v3639_v6  ;;  %3102 = vset.pattern.permute.xlu1 %v3296_v33 }
 0x2ce   :  { %3003 = vmatprep.subr.bf16.mxu1 %v3290_v3 }
 0x33c   :  { %v483_v41 = vpop.permute.xlu1 %482  ;;  %v838_v56 = vpop.permute.xlu0 %837 }
 0x33d   :  { %v487_v42 = vadd.f32 %v483_v41, %v370_v13 }
 0x33f   :  { %3136 = vtanh.f32 %v487_v42 }
 0x349   :  { %v3137_v49 = vpop.eup %3136 }
 0x34a   :  { %496 = vrot.lane.b32.xlu1 %v3137_v49, %s3294_s25 }
 0x399   :  { %v3606_v53 = vpop.f32.mrb[4].mxu0 }
 0x39a   :  { %v3608_v54 = vpop.f32.mrb[5].mxu0  ;;  %v3646_v9 = vpop.f32.mrb[4].mxu1 }
 0x39b   :  { %2781 = vmatprep.mubr.msk.f32.mxu0 %vm107_vm1, %v3608_v54  ;;  %v3648_v10 = vpop.f32.mrb[5].mxu1 }
 0x39c   :  { %2782 = vmatmul.mubr.msk.f32.vlgmr.msra.gmra.mrb[6].mxu0 %vm107_vm1, %v3606_v53  ;;  %2792 = vmatprep.mubr.msk.f32.mxu1 %vm107_vm1, %v3648_v10 }
 0x39d   :  { %2803 = vmatprep.mubr.msk.f32.mxu0 %vm107_vm1, %v838_v56  ;;  %2998 = vmatpush3.bf16.msra.mxu0 %v3596_v48 }
 0x39e   :  { %3000 = vmatprep.subr.bf16.mxu0 %v3610_v55  ;;  %2793 = vmatmul.mubr.msk.f32.vlgmr.msra.gmra.mrb[6].mxu1 %vm107_vm1, %v3646_v9 }
 0x39f   :  { %2810 = vmatprep.mubr.msk.f32.mxu1 %vm3291_vm0, %v3292_v11 }
 0x3a1   :  { %3002 = vmatpush3.bf16.msra.mxu0 %v3610_v55 }
 0x3a2   :  { %3012 = vmatprep.subr.bf16.mxu0 %v3290_v3 }
 0x3bc   :  { %v497_v58 = vpop.permute.xlu1 %496 }
 0x3bd   :  { %v501_v60 = vmul.f32 %v497_v58, %v491_v57 }
 0x3bf   :  { %v3621_v61 = vadd.f32 %v503_v59, %v501_v60 }
 0x3c1   :  { %839 = vrot.lane.b32.xlu1 %v3621_v61, %s3294_s25 }
 0x433   :  { %v840_v13 = vpop.permute.xlu1 %839 }
 0x434   :  { %2804 = vmatmul.mubr.msk.f32.vlgmr.msra.gmra.mrb[8].mxu0 %vm107_vm1, %v840_v13 }
 0x435   :  { %3014 = vmatpush3.bf16.msra.mxu0 %v3420_v8  ;;  %2832 = vmatprep.mubr.msk.f32.mxu0 %vm3291_vm0, %v3292_v11 }
 0x436   :  { %3015 = vmatprep.subr.bf16.mxu0 %v3290_v3 }
 0x439   :  { %3017 = vmatpush3.bf16.msra.mxu0 %v3443_v15 }
 0x43a   :  { %3027 = vmatprep.subr.bf16.mxu0 %v3452_v18 }
 0x43c   :  { %2833 = vmatmul.mubr.msk.f32.vlgmr.msra.gmra.mrb[10].mxu0 %vm107_vm1, %v3541_v20 }
 0x43d   :  { %3029 = vmatpush3.bf16.msra.mxu0 %v3452_v18  ;;  %2854 = vmatprep.mubr.msk.f32.mxu0 %vm107_vm1, %v838_v56 }
 0x43e   :  { %3031 = vmatprep.subr.bf16.mxu0 %v3475_v25 }
 0x441   :  { %3033 = vmatpush3.bf16.msra.mxu0 %v3475_v25 }
 0x444   :  { %2855 = vmatmul.mubr.msk.f32.vlgmr.msra.gmra.mrb[12].mxu0 %vm107_vm1, %v840_v13 }
 0x445   :  { %2864 = vmatprep.mubr.msk.f32.mxu0 %vm510_vm2, %v85_v43 }
 0x46f   :  { %v3671_v14 = vpop.f32.mrb[6].mxu0 }
 0x470   :  { %v745_v16 = vpop.f32.mrb[7].mxu0 }
 0x471   :  { %v3673_v17 = vpop.f32.mrb[6].mxu1 }
 0x472   :  { %v3675_v19 = vpop.f32.mrb[7].mxu1 }
 0x507   :  { %v2805_v20 = vpop.f32.mrb[8].mxu0 }
 0x508   :  { %v921_v23 = vadd.f32 %v2805_v20, %v3671_v14  ;;  %946 = vrot.lane.b32.xlu1 %v2805_v20, %s3295_s14  ;;  %v3679_v24 = vpop.f32.mrb[9].mxu0 }
 0x509   :  { %v920_v27 = vadd.f32 %v3679_v24, %v745_v16  ;;  %944 = vrot.lane.b32.xlu0 %v3679_v24, %s3295_s14 }
 0x50a   :  { %v929_v37 = vadd.f32 %v3687_v28, %v921_v23 }
 0x50b   :  { %v928_v38 = vadd.f32 %v3687_v28, %v920_v27 }
 0x50c   :  { %v2554_v43 = vmul.f32 -1.442695, %v929_v37 }
 0x50d   :  { %952 = vrot.lane.b32.xlu0 %v3687_v28, %s3295_s14  ;;  %v2553_v45 = vmul.f32 -1.442695, %v928_v38 }
 0x50e   :  { %3138 = vpow2.f32 %v2554_v43 }
 0x50f   :  { %v3691_v30 = vpop.f32.mrb[10].mxu0  ;;  %3140 = vpow2.f32 %v2553_v45 }
 0x510   :  { %v2834_v31 = vpop.f32.mrb[11].mxu0 }
 0x517   :  { %v3695_v34 = vpop.f32.mrb[12].mxu0 }
 0x518   :  { %v3697_v35 = vpop.f32.mrb[13].mxu0  ;;  %v3139_v0 = vpop.eup %3138 }
 0x519   :  { %v3141_v1 = vpop.eup %3140  ;;  %v937_v5 = vadd.f32 1.0, %v3139_v0 }
 0x51a   :  { %v936_v13 = vadd.f32 1.0, %v3141_v1 }
 0x57a   :  { %v947_v41 = vpop.permute.xlu1 %946 }
 0x57b   :  { %v945_v42 = vpop.permute.xlu0 %944  ;;  %v951_v46 = vadd.f32 %v3673_v17, %v947_v41 }
 0x57c   :  { %v950_v49 = vadd.f32 %v945_v42, %v3675_v19  ;;  %v969_v57 = vadd.f32 %v945_v42, %v745_v16 }
 0x57f   :  { %v3703_v51 = vpop.permute.xlu0 %952 }
 0x580   :  { %v956_v52 = vadd.f32 %v3703_v51, %v951_v46  ;;  %v955_v56 = vadd.f32 %v3703_v51, %v950_v49  ;;  %v971_v60 = vadd.f32 %v969_v57, %v3703_v51 }
 0x582   :  { %v2556_v58 = vmul.f32 -1.442695, %v956_v52  ;;  %v2555_v59 = vmul.f32 -1.442695, %v955_v56  ;;  %v2557_v63 = vmul.f32 -1.442695, %v971_v60 }
 0x583   :  { %v3298_v56 = vmov 1  }
 0x584   :  { %3142 = vpow2.f32 %v2556_v58 }
 0x585   :  { %3144 = vpow2.f32 %v2555_v59 }
 0x586   :  { %3146 = vpow2.f32 %v2557_v63 }
 0x587   :  { %3148 = vrcp.f32 %v937_v5 }
 0x588   :  { %3150 = vrcp.f32 %v936_v13  ;;  %v970_v13 = vadd.f32 %v3671_v14, %v947_v41 }
 0x58e   :  { %v3143_v23 = vpop.eup %3142 }
 0x58f   :  { %v3145_v27 = vpop.eup %3144  ;;  %v964_v31 = vadd.f32 1.0, %v3143_v23 }
 0x590   :  { %v963_v37 = vadd.f32 1.0, %v3145_v27  ;;  %v3147_v16 = vpop.eup %3146  ;;  %v972_v27 = vadd.f32 %v970_v13, %v3703_v51 }
 0x591   :  { %3152 = vrcp.f32 %v964_v31  ;;  %v979_v38 = vadd.f32 1.0, %v3147_v16  ;;  %v3149_v42 = vpop.eup %3148  ;;  %v3723_v16 = vld [vmem:[%s3961_s4] sm:$0xff] }
 0x592   :  { %3154 = vrcp.f32 %v963_v37  ;;  %v3151_v43 = vpop.eup %3150 }
 0x593   :  { %3156 = vrcp.f32 %v979_v38 }
 0x59b   :  { %v3153_v45 = vpop.eup %3152 }
 0x59c   :  { %v3155_v46 = vpop.eup %3154  ;;  %v1011_v49 = vadd.f32 %v3153_v45, %v3149_v42  ;;  %v2558_v42 = vmul.f32 -1.442695, %v972_v27 }
 0x59d   :  { %v1010_v52 = vadd.f32 %v3155_v46, %v3151_v43  ;;  %v3157_v57 = vpop.eup %3156 }
 0x59e   :  { %1019 = vperm.xlu0 %3103, %v1011_v49   ;;  %3158 = vpow2.f32 %v2558_v42 }
 0x59f   :  { %1014 = vperm.xlu1 %3102, %v1010_v52  }
 0x5a2   :  { %987 = vrot.lane.b32.xlu0 %v2805_v20, %s3297_s16 }
 0x5a3   :  { %3109 = vset.pattern.permute.xlu0 %v3298_v56  ;;  %3110 = vset.pattern.permute.xlu1 %v3298_v56 }
 0x5a6   :  { %1026 = vperm.xlu0 %3109, %v3157_v57  }
 0x61d   :  { %v1020_v58 = vpop.permute.xlu0 %1019 }
 0x61e   :  { %v1023_v59 = vmul.f32 %v1020_v58, %v3621_v61  ;;  %v1015_v60 = vpop.permute.xlu1 %1014 }
 0x61f   :  { %v1022_v63 = vmul.f32 %v1015_v60, %v3554_v32 }
 0x621   :  { %v3104_v0 = vpack.i.bf16 %v1023_v59, %v1022_v63  ;;  %v988_v31 = vpop.permute.xlu0 %987 }
 0x623   :  { %3105 = vrot.lane.b32.xlu1 %v3104_v0, %s3294_s25  ;;  %v1274_v0 = vadd.f32 %v3500_v29, %v3691_v30 }
 0x627   :  { %985 = vrot.lane.b32.xlu1 %v3679_v24, %s3297_s16  ;;  %v992_v24 = vadd.f32 %v3673_v17, %v988_v31 }
 0x62b   :  { %993 = vrot.lane.b32.xlu1 %v3687_v28, %s3297_s16 }
 0x695   :  { %v3106_v20 = vpop.permute.xlu1 %3105 }
 0x696   :  { %v3108_v1 = vunpack.i.h.bf16 %v3106_v20  ;;  %v3107_v5 = vunpack.i.l.bf16 %v3106_v20  ;;  %v1027_v20 = vpop.permute.xlu0 %1026 }
 0x698   :  { %v3004_v23 = vpack.c.bf16 %v3108_v1, %v3107_v5  ;;  %v1034_v5 = vmul.f32 %v1027_v20, %v3608_v54 }
 0x699   :  { %v986_v37 = vpop.permute.xlu1 %985 }
 0x69a   :  { %3005 = vmatpush3.bf16.msra.mxu1 %v3004_v23  ;;  %v991_v38 = vadd.f32 %v986_v37, %v3675_v19  ;;  %v3159_v19 = vpop.eup %3158 }
 0x69b   :  { %3006 = vmatprep.subr.bf16.mxu1 %v3290_v3  ;;  %v980_v58 = vadd.f32 1.0, %v3159_v19 }
 0x69d   :  { %v3728_v14 = vpop.permute.xlu1 %993  ;;  %2811 = vmatmul.mubr.msk.f32.vlgmr.msra.gmra.mrb[8].mxu1 %vm1058_vm3, %v3723_v16 }
 0x69e   :  { %v996_v41 = vadd.f32 %v3728_v14, %v991_v38  ;;  %v997_v43 = vadd.f32 %v3728_v14, %v992_v24  ;;  %3008 = vmatpush3.bf16.msra.mxu1 %v3409_v4  ;;  %2821 = vmatprep.mubr.msk.f32.mxu1 %vm3291_vm0, %v3292_v11 }
 0x69f   :  { %3009 = vmatprep.subr.bf16.mxu1 %v3290_v3 }
 0x6a0   :  { %v2559_v17 = vmul.f32 -1.442695, %v996_v41  ;;  %v2560_v45 = vmul.f32 -1.442695, %v997_v43 }
 0x6a2   :  { %3160 = vpow2.f32 %v2559_v17  ;;  %3011 = vmatpush3.bf16.msra.mxu1 %v3433_v12 }
 0x6a3   :  { %3162 = vpow2.f32 %v2560_v45  ;;  %3019 = vmatprep.subr.bf16.mxu1 %v3460_v21 }
 0x6ac   :  { %v3161_v46 = vpop.eup %3160 }
 0x6ad   :  { %v3163_v49 = vpop.eup %3162  ;;  %v1004_v52 = vadd.f32 1.0, %v3161_v46 }
 0x6ae   :  { %v1005_v57 = vadd.f32 1.0, %v3163_v49 }
 0x6af   :  { %3164 = vrcp.f32 %v1004_v52 }
 0x6b0   :  { %3166 = vrcp.f32 %v1005_v57 }
 0x6b1   :  { %3168 = vrcp.f32 %v980_v58 }
 0x6b9   :  { %v3165_v59 = vpop.eup %3164 }
 0x6ba   :  { %v3167_v60 = vpop.eup %3166  ;;  %1038 = vperm.xlu1 %3110, %v3165_v59  }
 0x6bb   :  { %1043 = vperm.xlu0 %3109, %v3167_v60   ;;  %v3169_v63 = vpop.eup %3168 }
 0x6be   :  { %1031 = vperm.xlu1 %3110, %v3169_v63  }
 0x6bf   :  { %3112 = vset.pattern.permute.xlu0 %v3296_v33 }
 0x6c2   :  { %1285 = vrot.lane.b32.xlu1 %v1274_v0, %s3293_s1 }
 0x6c3   :  { %3111 = vset.pattern.permute.xlu1 %v3296_v33 }
 0x739   :  { %v1039_v1 = vpop.permute.xlu1 %1038 }
 0x73a   :  { %v1046_v13 = vmul.f32 %v1039_v1, %v3648_v10  ;;  %v1044_v23 = vpop.permute.xlu0 %1043 }
 0x73b   :  { %v1047_v37 = vmul.f32 %v3646_v9, %v1044_v23 }
 0x73c   :  { %v1048_v27 = vadd.f32 %v1046_v13, %v1034_v5 }
 0x73d   :  { %v1032_v31 = vpop.permute.xlu1 %1031 }
 0x73e   :  { %v1035_v24 = vmul.f32 %v3606_v53, %v1032_v31  ;;  %v1456_v31 = vadd.f32 %v3695_v34, %v3513_v47 }
 0x740   :  { %v1049_v38 = vadd.f32 %v1047_v37, %v1035_v24 }
 0x741   :  { %v1286_v19 = vpop.permute.xlu1 %1285 }
 0x770   :  { %v1128_v42 = vpop.f32.mrb[8].mxu1 }
 0x771   :  { %v2812_v29 = vpop.f32.mrb[9].mxu1  ;;  %2822 = vmatmul.mubr.msk.f32.vlgmr.msra.gmra.mrb[10].mxu1 %vm107_vm1, %v1128_v42 }
 0x772   :  { %3021 = vmatpush3.bf16.msra.mxu1 %v3460_v21  ;;  %2843 = vmatprep.mubr.msk.f32.mxu1 %vm107_vm1, %v1048_v27 }
 0x773   :  { %3023 = vmatprep.subr.bf16.mxu1 %v3477_v26 }
 0x776   :  { %3025 = vmatpush3.bf16.msra.mxu1 %v3477_v26 }
 0x779   :  { %2844 = vmatmul.mubr.msk.f32.vlgmr.msra.gmra.mrb[12].mxu1 %vm107_vm1, %v1049_v38 }
 0x77a   :  { %2859 = vmatprep.mubr.msk.f32.mxu1 %vm510_vm2, %v3529_v62 }
 0x844   :  { %v1201_v54 = vpop.f32.mrb[10].mxu1 }
 0x845   :  { %v1202_v53 = vadd.f32 %v3507_v39, %v1201_v54  ;;  %v2823_v9 = vpop.f32.mrb[11].mxu1  ;;  %v1451_v39 = vadd.f32 %v3513_v47, %v3697_v35 }
 0x847   :  { %v1277_v10 = vadd.f32 %v1274_v0, %v1202_v53 }
 0x849   :  { %v2564_v30 = vmul.f32 -1.442695, %v1277_v10 }
 0x84b   :  { %3170 = vpow2.f32 %v2564_v30 }
 0x84c   :  { %v2845_v33 = vpop.f32.mrb[12].mxu1 }
 0x84d   :  { %v1375_v41 = vpop.f32.mrb[13].mxu1  ;;  %v1381_v37 = vadd.f32 %v2845_v33, %v3521_v50 }
 0x84e   :  { %v1376_v57 = vadd.f32 %v3521_v50, %v1375_v41 }
 0x84f   :  { %v1460_v24 = vadd.f32 %v1456_v31, %v1381_v37 }
 0x850   :  { %v1459_v58 = vadd.f32 %v1451_v39, %v1376_v57 }
 0x852   :  { %v2569_v59 = vmul.f32 -1.442695, %v1459_v58 }
 0x855   :  { %v3171_v43 = vpop.eup %3170 }
 0x856   :  { %v1281_v17 = vadd.f32 1.0, %v3171_v43 }
 0x858   :  { %3172 = vrcp.f32 %v1281_v17 }
 0x862   :  { %v3173_v45 = vpop.eup %3172 }
 0x863   :  { %v1288_v46 = vmul.f32 %v3173_v45, %v1286_v19  ;;  %v1295_v0 = vsub.f32 1.0, %v3173_v45  ;;  %v1301_v1 = vmul.f32 %v3173_v45, %v3533_v7  ;;  %v2570_v7 = vmul.f32 -1.442695, %v1460_v24 }
 0x865   :  { %1290 = vrot.lane.b32.xlu0 %v1288_v46, %s3293_s1 }
 0x8d7   :  { %v1291_v49 = vpop.permute.xlu0 %1290 }
 0x8d8   :  { %v1293_v52 = vadd.f32 %v1291_v49, %v1202_v53 }
 0x8da   :  { %3174 = vtanh.f32 %v1293_v52 }
 0x8db   :  { %3176 = vpow2.f32 %v2569_v59 }
 0x8e4   :  { %v3175_v62 = vpop.eup %3174 }
 0x8e5   :  { %1297 = vrot.lane.b32.xlu1 %v3175_v62, %s3294_s25  ;;  %v3177_v60 = vpop.eup %3176 }
 0x8e6   :  { %v1467_v63 = vadd.f32 1.0, %v3177_v60 }
 0x8e8   :  { %3178 = vrcp.f32 %v1467_v63 }
 0x8e9   :  { %1475 = vrot.lane.b32.xlu1 %v1451_v39, %s3293_s1  ;;  %3180 = vpow2.f32 %v2570_v7 }
 0x8f2   :  { %v3179_v23 = vpop.eup %3178 }
 0x8f3   :  { %v3181_v38 = vpop.eup %3180  ;;  %v1495_v10 = vsub.f32 1.0, %v3179_v23  ;;  %v1507_v30 = vmul.f32 %v3179_v23, %v3554_v32 }
 0x8f4   :  { %v1468_v42 = vadd.f32 1.0, %v3181_v38 }
 0x8f6   :  { %3182 = vrcp.f32 %v1468_v42 }
 0x900   :  { %v3183_v50 = vpop.eup %3182 }
 0x901   :  { %v1496_v32 = vsub.f32 1.0, %v3183_v50  ;;  %v1508_v19 = vmul.f32 %v3183_v50, %v3621_v61 }
 0x957   :  { %v1298_v20 = vpop.permute.xlu1 %1297 }
 0x958   :  { %v1300_v5 = vmul.f32 %v1298_v20, %v1295_v0 }
 0x95a   :  { %v3765_v13 = vadd.f32 %v1301_v1, %v1300_v5 }
 0x95b   :  { %v1476_v27 = vpop.permute.xlu1 %1475 }
 0x95c   :  { %v1481_v35 = vmul.f32 %v3179_v23, %v1476_v27  ;;  %1512 = vrot.lane.b32.xlu0 %v3765_v13, %s3294_s25 }
 0x95e   :  { %1485 = vrot.lane.b32.xlu1 %v1481_v35, %s3293_s1 }
 0x960   :  { %1477 = vrot.lane.b32.xlu0 %v1456_v31, %s3293_s1 }
 0x9ce   :  { %v3774_v29 = vpop.permute.xlu0 %1512 }
 0x9cf   :  { %2857 = vmatprep.subr.mxu1 %v3774_v29  ;;  %2862 = vmatprep.subr.mxu0 %v3774_v29 }
 0x9d0   :  { %2858 = vmatpush3.msra.mxu1 %v3774_v29  ;;  %2863 = vmatpush3.msra.mxu0 %v3774_v29  ;;  %v1486_v34 = vpop.permute.xlu1 %1485 }
 0x9d1   :  { %v1491_v54 = vadd.f32 %v1486_v34, %v1376_v57  ;;  %2860 = vmatmul.mubr.msk.f32.vlgmr.msra.gmra.mrb[14].mxu1 %vm510_vm2, %v3546_v22  ;;  %3035 = vmatprep.subr.bf16.mxu1 %v3565_v36 }
 0x9d2   :  { %v1478_v53 = vpop.permute.xlu0 %1477  ;;  %3037 = vmatpush3.bf16.msra.mxu1 %v3565_v36  ;;  %2865 = vmatmul.mubr.msk.f32.vlgmr.msra.gmra.mrb[14].mxu0 %vm510_vm2, %v3585_v44 }
 0x9d3   :  { %3184 = vtanh.f32 %v1491_v54  ;;  %v1482_v9 = vmul.f32 %v3183_v50, %v1478_v53  ;;  %3039 = vmatprep.subr.bf16.mxu1 %v3573_v40  ;;  %3043 = vmatprep.subr.bf16.mxu0 %v3634_v2 }
 0x9d4   :  { %3045 = vmatpush3.bf16.msra.mxu0 %v3634_v2 }
 0x9d5   :  { %1487 = vrot.lane.b32.xlu0 %v1482_v9, %s3293_s1  ;;  %3047 = vmatprep.subr.bf16.mxu0 %v3639_v6 }
 0x9d6   :  { %3041 = vmatpush3.bf16.msra.mxu1 %v3573_v40 }
 0x9d7   :  { %3051 = vmatprep.subr.bf16.mxu1 %v3596_v48 }
 0x9d8   :  { %3049 = vmatpush3.bf16.msra.mxu0 %v3639_v6 }
 0x9d9   :  { %3058 = vmatprep.subr.bf16.mxu0 %v3290_v3 }
 0x9dd   :  { %v3185_v22 = vpop.eup %3184 }
 0x9de   :  { %1499 = vrot.lane.b32.xlu1 %v3185_v22, %s3294_s25 }
 0xa47   :  { %v1488_v36 = vpop.permute.xlu0 %1487 }
 0xa48   :  { %v1492_v44 = vadd.f32 %v1488_v36, %v1381_v37 }
 0xa4a   :  { %3186 = vtanh.f32 %v1492_v44 }
 0xa50   :  { %v1500_v2 = vpop.permute.xlu1 %1499 }
 0xa51   :  { %v1505_v33 = vmul.f32 %v1500_v2, %v1495_v10 }
 0xa53   :  { %v3797_v41 = vadd.f32 %v1507_v30, %v1505_v33 }
 0xa54   :  { %v3187_v40 = vpop.eup %3186 }
 0xa55   :  { %1501 = vrot.lane.b32.xlu0 %v3187_v40, %s3294_s25  ;;  %1829 = vrot.lane.b32.xlu1 %v3797_v41, %s3294_s25 }
 0xaa4   :  { %v3802_v6 = vpop.f32.mrb[14].mxu1 }
 0xaa5   :  { %v3804_v43 = vpop.f32.mrb[15].mxu1 }
 0xaa6   :  { %2875 = vmatprep.mubr.msk.f32.mxu1 %vm107_vm1, %v3804_v43 }
 0xaa7   :  { %2876 = vmatmul.mubr.msk.f32.vlgmr.msra.gmra.mrb[16].mxu1 %vm107_vm1, %v3802_v6 }
 0xaa8   :  { %3053 = vmatpush3.bf16.msra.mxu1 %v3596_v48  ;;  %v3820_v48 = vpop.f32.mrb[14].mxu0 }
 0xaa9   :  { %3055 = vmatprep.subr.bf16.mxu1 %v3610_v55  ;;  %v3822_v52 = vpop.f32.mrb[15].mxu0 }
 0xaaa   :  { %2886 = vmatprep.mubr.msk.f32.mxu0 %vm107_vm1, %v3822_v52 }
 0xaab   :  { %2887 = vmatmul.mubr.msk.f32.vlgmr.msra.gmra.mrb[16].mxu0 %vm107_vm1, %v3820_v48 }
 0xaac   :  { %3057 = vmatpush3.bf16.msra.mxu1 %v3610_v55  ;;  %2904 = vmatprep.mubr.msk.f32.mxu0 %vm3291_vm0, %v3292_v11 }
 0xaad   :  { %3067 = vmatprep.subr.bf16.mxu1 %v3290_v3 }
 0xac7   :  { %v1502_v17 = vpop.permute.xlu0 %1501  ;;  %v1830_v45 = vpop.permute.xlu1 %1829 }
 0xac8   :  { %v1506_v46 = vmul.f32 %v1502_v17, %v1496_v32  ;;  %2897 = vmatprep.mubr.msk.f32.mxu1 %vm107_vm1, %v1830_v45 }
 0xaca   :  { %v3816_v49 = vadd.f32 %v1508_v19, %v1506_v46 }
 0xacc   :  { %1831 = vrot.lane.b32.xlu0 %v3816_v49, %s3294_s25 }
 0xb3e   :  { %v1832_v55 = vpop.permute.xlu0 %1831 }
 0xb3f   :  { %2898 = vmatmul.mubr.msk.f32.vlgmr.msra.gmra.mrb[18].mxu1 %vm107_vm1, %v1832_v55 }
 0xb40   :  { %3069 = vmatpush3.bf16.msra.mxu1 %v3420_v8  ;;  %2926 = vmatprep.mubr.msk.f32.mxu1 %vm3291_vm0, %v3292_v11 }
 0xb41   :  { %3070 = vmatprep.subr.bf16.mxu1 %v3290_v3 }
 0xb44   :  { %3072 = vmatpush3.bf16.msra.mxu1 %v3443_v15 }
 0xb45   :  { %3082 = vmatprep.subr.bf16.mxu1 %v3452_v18 }
 0xb47   :  { %2927 = vmatmul.mubr.msk.f32.vlgmr.msra.gmra.mrb[20].mxu1 %vm107_vm1, %v3774_v29 }
 0xb48   :  { %3084 = vmatpush3.bf16.msra.mxu1 %v3452_v18  ;;  %2948 = vmatprep.mubr.msk.f32.mxu1 %vm107_vm1, %v1830_v45 }
 0xb49   :  { %3086 = vmatprep.subr.bf16.mxu1 %v3475_v25 }
 0xb4c   :  { %3088 = vmatpush3.bf16.msra.mxu1 %v3475_v25 }
 0xb4f   :  { %2949 = vmatmul.mubr.msk.f32.vlgmr.msra.gmra.mrb[22].mxu1 %vm107_vm1, %v1832_v55 }
 0xb7a   :  { %v2877_v8 = vpop.f32.mrb[16].mxu1 }
 0xb7b   :  { %v1737_v61 = vpop.f32.mrb[17].mxu1 }
 0xb7e   :  { %v3844_v62 = vpop.f32.mrb[16].mxu0 }
 0xb7f   :  { %v3846_v15 = vpop.f32.mrb[17].mxu0 }
 0xc12   :  { %v2899_v39 = vpop.f32.mrb[18].mxu1 }
 0xc13   :  { %v1913_v57 = vadd.f32 %v2899_v39, %v2877_v8  ;;  %1932 = vrot.lane.b32.xlu0 %v2899_v39, %s3295_s14  ;;  %v3849_v58 = vpop.f32.mrb[19].mxu1 }
 0xc14   :  { %v1912_v18 = vadd.f32 %v3849_v58, %v1737_v61  ;;  %1930 = vrot.lane.b32.xlu1 %v3849_v58, %s3295_s14 }
 0xc15   :  { %v1915_v0 = vadd.f32 %v3687_v28, %v1913_v57 }
 0xc16   :  { %v1914_v20 = vadd.f32 %v3687_v28, %v1912_v18 }
 0xc17   :  { %v2582_v1 = vmul.f32 -1.442695, %v1915_v0 }
 0xc18   :  { %v2581_v5 = vmul.f32 -1.442695, %v1914_v20 }
 0xc19   :  { %3188 = vpow2.f32 %v2582_v1 }
 0xc1a   :  { %v3854_v25 = vpop.f32.mrb[20].mxu1  ;;  %3190 = vpow2.f32 %v2581_v5 }
 0xc1b   :  { %v2928_v59 = vpop.f32.mrb[21].mxu1 }
 0xc22   :  { %v3856_v60 = vpop.f32.mrb[22].mxu1 }
 0xc23   :  { %v3858_v63 = vpop.f32.mrb[23].mxu1  ;;  %v3189_v42 = vpop.eup %3188 }
 0xc24   :  { %v3191_v28 = vpop.eup %3190  ;;  %v1923_v29 = vadd.f32 1.0, %v3189_v42 }
 0xc25   :  { %v1922_v54 = vadd.f32 1.0, %v3191_v28 }
 0xc85   :  { %v1933_v23 = vpop.permute.xlu0 %1932 }
 0xc86   :  { %v1937_v27 = vadd.f32 %v3844_v62, %v1933_v23  ;;  %v1931_v35 = vpop.permute.xlu1 %1930  ;;  %v1953_v40 = vadd.f32 %v2877_v8, %v1933_v23 }
 0xc87   :  { %v1936_v31 = vadd.f32 %v1931_v35, %v3846_v15  ;;  %v1952_v33 = vadd.f32 %v1931_v35, %v1737_v61 }
 0xc88   :  { %v1939_v37 = vadd.f32 %v1937_v27, %v3703_v51  ;;  %v1955_v17 = vadd.f32 %v1953_v40, %v3703_v51 }
 0xc89   :  { %v1938_v24 = vadd.f32 %v1936_v31, %v3703_v51  ;;  %v1954_v32 = vadd.f32 %v1952_v33, %v3703_v51 }
 0xc8a   :  { %v2584_v7 = vmul.f32 -1.442695, %v1939_v37  ;;  %v2586_v19 = vmul.f32 -1.442695, %v1955_v17 }
 0xc8b   :  { %v2583_v38 = vmul.f32 -1.442695, %v1938_v24  ;;  %v2585_v45 = vmul.f32 -1.442695, %v1954_v32 }
 0xc8c   :  { %3192 = vpow2.f32 %v2584_v7 }
 0xc8d   :  { %3194 = vpow2.f32 %v2583_v38 }
 0xc8e   :  { %3196 = vrcp.f32 %v1923_v29 }
 0xc96   :  { %v3193_v34 = vpop.eup %3192 }
 0xc97   :  { %v1947_v50 = vadd.f32 1.0, %v3193_v34  ;;  %v3195_v53 = vpop.eup %3194 }
 0xc98   :  { %v1946_v9 = vadd.f32 1.0, %v3195_v53  ;;  %v3197_v22 = vpop.eup %3196 }
 0xc99   :  { %3198 = vrcp.f32 %v1947_v50 }
 0xc9a   :  { %3200 = vrcp.f32 %v1922_v54 }
 0xc9b   :  { %3202 = vrcp.f32 %v1946_v9 }
 0xc9c   :  { %3204 = vpow2.f32 %v2585_v45 }
 0xc9d   :  { %3206 = vpow2.f32 %v2586_v19 }
 0xca3   :  { %v3199_v36 = vpop.eup %3198 }
 0xca4   :  { %v3201_v44 = vpop.eup %3200  ;;  %v1991_v10 = vadd.f32 %v3199_v36, %v3197_v22 }
 0xca5   :  { %v3203_v2 = vpop.eup %3202 }
 0xca6   :  { %1999 = vperm.xlu0 %3112, %v1991_v10   ;;  %v1990_v30 = vadd.f32 %v3203_v2, %v3201_v44  ;;  %v3205_v46 = vpop.eup %3204 }
 0xca7   :  { %v1962_v55 = vadd.f32 1.0, %v3205_v46  ;;  %v3207_v18 = vpop.eup %3206 }
 0xca8   :  { %1994 = vperm.xlu1 %3111, %v1990_v30  }
 0xca9   :  { %3208 = vrcp.f32 %v1962_v55 }
 0xcaa   :  { %1970 = vrot.lane.b32.xlu0 %v2899_v39, %s3297_s16 }
 0xcab   :  { %3119 = vset.pattern.permute.xlu0 %v3298_v56 }
 0xcac   :  { %3118 = vset.pattern.permute.xlu1 %v3298_v56  ;;  %v1963_v56 = vadd.f32 1.0, %v3207_v18 }
 0xcae   :  { %3210 = vrcp.f32 %v1963_v56 }
 0xcb3   :  { %v3209_v5 = vpop.eup %3208 }
 0xcb8   :  { %v3211_v23 = vpop.eup %3210 }
 0xd25   :  { %v2000_v57 = vpop.permute.xlu0 %1999 }
 0xd26   :  { %v2003_v39 = vmul.f32 %v2000_v57, %v3816_v49 }
 0xd27   :  { %v1995_v59 = vpop.permute.xlu1 %1994 }
 0xd28   :  { %v2002_v0 = vmul.f32 %v1995_v59, %v3797_v41 }
 0xd29   :  { %v1971_v8 = vpop.permute.xlu0 %1970 }
 0xd2a   :  { %v3113_v61 = vpack.i.bf16 %v2003_v39, %v2002_v0  ;;  %v1975_v20 = vadd.f32 %v3844_v62, %v1971_v8  ;;  %v2427_v62 = vadd.f32 %v3513_v47, %v3858_v63 }
 0xd2c   :  { %v1977_v51 = vadd.f32 %v1975_v20, %v3728_v14  ;;  %3114 = vrot.lane.b32.xlu1 %v3113_v61, %s3294_s25 }
 0xd2e   :  { %v2588_v1 = vmul.f32 -1.442695, %v1977_v51 }
 0xd30   :  { %3212 = vpow2.f32 %v2588_v1  ;;  %1968 = vrot.lane.b32.xlu1 %v3849_v58, %s3297_s16 }
 0xd34   :  { %2006 = vperm.xlu1 %3118, %v3209_v5  }
 0xd38   :  { %2011 = vperm.xlu1 %3118, %v3211_v23  }
 0xd3a   :  { %v3213_v27 = vpop.eup %3212 }
 0xd3b   :  { %v1985_v35 = vadd.f32 1.0, %v3213_v27 }
 0xd3d   :  { %3214 = vrcp.f32 %v1985_v35 }
 0xd47   :  { %v3215_v31 = vpop.eup %3214 }
 0xd48   :  { %2023 = vperm.xlu1 %3118, %v3215_v31  }
 0xd4c   :  { %2451 = vrot.lane.b32.xlu1 %v2427_v62, %s3293_s1 }
 0xd9e   :  { %v3115_v37 = vpop.permute.xlu1 %3114 }
 0xd9f   :  { %v3117_v24 = vunpack.i.h.bf16 %v3115_v37  ;;  %v3116_v7 = vunpack.i.l.bf16 %v3115_v37 }
 0xda1   :  { %v3059_v38 = vpack.c.bf16 %v3117_v24, %v3116_v7 }
 0xda2   :  { %v1969_v42 = vpop.permute.xlu1 %1968 }
 0xda3   :  { %v1974_v58 = vadd.f32 %v1969_v42, %v3846_v15  ;;  %3060 = vmatpush3.bf16.msra.mxu0 %v3059_v38 }
 0xda4   :  { %3061 = vmatprep.subr.bf16.mxu0 %v3290_v3 }
 0xda5   :  { %v1976_v28 = vadd.f32 %v1974_v58, %v3728_v14 }
 0xda6   :  { %2905 = vmatmul.mubr.msk.f32.vlgmr.msra.gmra.mrb[18].mxu0 %vm1058_vm3, %v3723_v16 }
 0xda7   :  { %v2587_v29 = vmul.f32 -1.442695, %v1976_v28  ;;  %3063 = vmatpush3.bf16.msra.mxu0 %v3409_v4  ;;  %2915 = vmatprep.mubr.msk.f32.mxu0 %vm3291_vm0, %v3292_v11  ;;  %v3238_v4 = vld [vmem:[%s3965_s8] ss:$0 sm:$0xff] }
 0xda8   :  { %3064 = vmatprep.subr.bf16.mxu0 %v3290_v3  ;;  %v2250_v16 = vadd.f32 %v3238_v4, %v3854_v25  ;;  %v3239_v3 = vld [vmem:[%s3969_s12] ss:$0 sm:$0xff] }
 0xda9   :  { %3216 = vpow2.f32 %v2587_v29 }
 0xdab   :  { %3066 = vmatpush3.bf16.msra.mxu0 %v3433_v12  ;;  %v2432_v12 = vadd.f32 %v3239_v3, %v3856_v60 }
 0xdac   :  { %3074 = vmatprep.subr.bf16.mxu0 %v3460_v21 }
 0xdb3   :  { %v3217_v47 = vpop.eup %3216  ;;  %v2007_v14 = vpop.permute.xlu1 %2006 }
 0xdb4   :  { %v1984_v15 = vadd.f32 1.0, %v3217_v47  ;;  %v2014_v25 = vmul.f32 %v2007_v14, %v3804_v43  ;;  %v3240_v43 = vld [vmem:[%s3964_s7] ss:$0 sm:$0xff]  ;;  %s3299_s7 = smov [#allocation2]  }
 0xdb6   :  { %3218 = vrcp.f32 %v1984_v15 }
 0xdb7   :  { %v2012_v11 = vpop.permute.xlu1 %2011 }
 0xdb8   :  { %v2015_v54 = vmul.f32 %v3802_v6, %v2012_v11 }
 0xdc0   :  { %v3219_v63 = vpop.eup %3218 }
 0xdc1   :  { %2018 = vperm.xlu0 %3119, %v3219_v63  }
 0xdc5   :  { %2261 = vrot.lane.b32.xlu0 %v2250_v16, %s3293_s1 }
 0xdc7   :  { %v2024_v34 = vpop.permute.xlu1 %2023 }
 0xdc8   :  { %v2027_v50 = vmul.f32 %v3820_v48, %v2024_v34 }
 0xdc9   :  { %2453 = vrot.lane.b32.xlu0 %v2432_v12, %s3293_s1 }
 0xdca   :  { %v2029_v53 = vadd.f32 %v2027_v50, %v2015_v54 }
 0xdcb   :  { %v2452_v1 = vpop.permute.xlu1 %2451 }
 0xe40   :  { %v2019_v9 = vpop.permute.xlu0 %2018 }
 0xe41   :  { %v2026_v22 = vmul.f32 %v2019_v9, %v3822_v52 }
 0xe43   :  { %v2028_v36 = vadd.f32 %v2026_v22, %v2014_v25 }
 0xe44   :  { %v2262_v56 = vpop.permute.xlu0 %2261 }
 0xe48   :  { %v2454_v20 = vpop.permute.xlu0 %2453 }
 0xe79   :  { %v2104_v44 = vpop.f32.mrb[18].mxu0 }
 0xe7a   :  { %v2906_v10 = vpop.f32.mrb[19].mxu0  ;;  %2916 = vmatmul.mubr.msk.f32.vlgmr.msra.gmra.mrb[20].mxu0 %vm107_vm1, %v2104_v44 }
 0xe7b   :  { %3076 = vmatpush3.bf16.msra.mxu0 %v3460_v21  ;;  %2937 = vmatprep.mubr.msk.f32.mxu0 %vm107_vm1, %v2028_v36  ;;  %v3241_v21 = vld [vmem:[%s3968_s11] ss:$0 sm:$0xff]  ;;  %s2508_s11 = sshll.u32 %s3299_s7, 4  ;;  %s2509_s11 = int_to_ptr.vmem [resolvable:$true] %s2508_s11 }
 0xe7c   :  { %3078 = vmatprep.subr.bf16.mxu0 %v3477_v26  ;;  %p3247_p1 = scmp.lt.s32.totalorder %s2509_s11, %s2509_s11 }
 0xe7f   :  { %3080 = vmatpush3.bf16.msra.mxu0 %v3477_v26 }
 0xe82   :  { %2938 = vmatmul.mubr.msk.f32.vlgmr.msra.gmra.mrb[22].mxu0 %vm107_vm1, %v2029_v53 }
 0xf4d   :  { %v2177_v6 = vpop.f32.mrb[20].mxu0 }
 0xf4e   :  { %v2178_v48 = vadd.f32 %v3240_v43, %v2177_v6  ;;  %v2917_v52 = vpop.f32.mrb[21].mxu0 }
 0xf50   :  { %v2253_v60 = vadd.f32 %v2250_v16, %v2178_v48 }
 0xf52   :  { %v2592_v2 = vmul.f32 -1.442695, %v2253_v60 }
 0xf54   :  { %3220 = vpow2.f32 %v2592_v2 }
 0xf55   :  { %v2939_v30 = vpop.f32.mrb[22].mxu0 }
 0xf56   :  { %v2357_v33 = vadd.f32 %v3241_v21, %v2939_v30  ;;  %v2351_v40 = vpop.f32.mrb[23].mxu0 }
 0xf57   :  { %v2352_v26 = vadd.f32 %v3241_v21, %v2351_v40 }
 0xf58   :  { %v2436_v32 = vadd.f32 %v2432_v12, %v2357_v33 }
 0xf59   :  { %v2435_v17 = vadd.f32 %v2427_v62, %v2352_v26 }
 0xf5a   :  { %v2598_v45 = vmul.f32 -1.442695, %v2436_v32 }
 0xf5b   :  { %v2597_v19 = vmul.f32 -1.442695, %v2435_v17 }
 0xf5c   :  { %3222 = vpow2.f32 %v2598_v45 }
 0xf5d   :  { %3224 = vpow2.f32 %v2597_v19 }
 0xf5e   :  { %v3221_v46 = vpop.eup %3220 }
 0xf5f   :  { %v2257_v55 = vadd.f32 1.0, %v3221_v46 }
 0xf61   :  { %3226 = vrcp.f32 %v2257_v55 }
 0xf66   :  { %v3223_v57 = vpop.eup %3222 }
 0xf67   :  { %v3225_v18 = vpop.eup %3224  ;;  %v2444_v39 = vadd.f32 1.0, %v3223_v57 }
 0xf68   :  { %v2443_v59 = vadd.f32 1.0, %v3225_v18 }
 0xf69   :  { %3228 = vrcp.f32 %v2444_v39 }
 0xf6a   :  { %3230 = vrcp.f32 %v2443_v59 }
 0xf6b   :  { %v3227_v0 = vpop.eup %3226 }
 0xf6c   :  { %v2264_v8 = vmul.f32 %v3227_v0, %v2262_v56  ;;  %v2271_v58 = vsub.f32 1.0, %v3227_v0  ;;  %v2277_v29 = vmul.f32 %v3227_v0, %v3765_v13 }
 0xf6e   :  { %2266 = vrot.lane.b32.xlu1 %v2264_v8, %s3293_s1 }
 0xf73   :  { %v3229_v61 = vpop.eup %3228 }
 0xf74   :  { %v3231_v51 = vpop.eup %3230  ;;  %v2458_v5 = vmul.f32 %v3229_v61, %v2454_v20  ;;  %v2472_v14 = vsub.f32 1.0, %v3229_v61  ;;  %v2484_v16 = vmul.f32 %v3229_v61, %v3816_v49 }
 0xf75   :  { %v2457_v23 = vmul.f32 %v3231_v51, %v2452_v1  ;;  %v2471_v4 = vsub.f32 1.0, %v3231_v51  ;;  %v2483_v12 = vmul.f32 %v3231_v51, %v3797_v41 }
 0xf76   :  { %2463 = vrot.lane.b32.xlu1 %v2458_v5, %s3293_s1 }
 0xf77   :  { %2461 = vrot.lane.b32.xlu0 %v2457_v23, %s3293_s1  ;;  %s3242_s1 = scalar_lea.vmem %s2509_s11, 128 }
 0xf78   :  { %p3243_p0 = scmp.ne.s32.totalorder %s2509_s11, %s3242_s1  ;;  %p3248_p2 = scmp.lt.s32.totalorder %s3242_s1, %s3242_s1 }
 0xf7a   :  { %p3249_p3 = por %p3248_p2, %p3247_p1 }
 0xf7c   :  { %p3250_p4 = pnand %p3249_p3, %p3243_p0 }
 0xfe0   :  { %v2267_v27 = vpop.permute.xlu1 %2266 }
 0xfe1   :  { %v2269_v35 = vadd.f32 %v2267_v27, %v2178_v48 }
 0xfe3   :  { %3232 = vtanh.f32 %v2269_v35 }
 0xfe8   :  { %v2464_v31 = vpop.permute.xlu1 %2463 }
 0xfe9   :  { %v2468_v62 = vadd.f32 %v2464_v31, %v2357_v33  ;;  %v2462_v37 = vpop.permute.xlu0 %2461 }
 0xfea   :  { %v2467_v24 = vadd.f32 %v2462_v37, %v2352_v26 }
 0xfeb   :  { %3234 = vtanh.f32 %v2468_v62 }
 0xfec   :  { %3236 = vtanh.f32 %v2467_v24 }
 0xfed   :  { %v3233_v7 = vpop.eup %3232 }
 0xfee   :  { %2273 = vrot.lane.b32.xlu0 %v3233_v7, %s3294_s25 }
 0xff5   :  { %v3235_v38 = vpop.eup %3234 }
 0xff6   :  { %v3237_v42 = vpop.eup %3236  ;;  %2477 = vrot.lane.b32.xlu0 %v3235_v38, %s3294_s25 }
 0xff7   :  { %2475 = vrot.lane.b32.xlu1 %v3237_v42, %s3294_s25 }
0x1060   :  { %v2274_v28 = vpop.permute.xlu0 %2273 }
0x1061   :  { %v2276_v47 = vmul.f32 %v2274_v28, %v2271_v58 }
0x1063   :  { %v2278_v15 = vadd.f32 %v2277_v29, %v2276_v47 }
0x1065   :  { %2488 = vrot.lane.b32.xlu1 %v2278_v15, %s3294_s25 }
0x1068   :  { %v2478_v63 = vpop.permute.xlu0 %2477 }
0x1069   :  { %v2482_v11 = vmul.f32 %v2478_v63, %v2472_v14  ;;  %v2476_v3 = vpop.permute.xlu1 %2475 }
0x106a   :  { %v2481_v34 = vmul.f32 %v2476_v3, %v2471_v4 }
0x106b   :  { %v2486_v54 = vadd.f32 %v2484_v16, %v2482_v11 }
0x106c   :  { %v2485_v50 = vadd.f32 %v2483_v12, %v2481_v34 }
0x106d   :  { %2496 = vrot.lane.b32.xlu1 %v2486_v54, %s3294_s25 }
0x106e   :  { %2494 = vrot.lane.b32.xlu0 %v2485_v50, %s3294_s25 }
0x10d7   :  { %v2489_v13 = vpop.permute.xlu1 %2488 }
0x10d8   :  { %2491 = vst.msk [vmem:[#allocation2] sm:$0xff] %vm107_vm1, %v2489_v13 }
0x10d9   :  { %3253 = shalt.err (!%p3250_p4)
}
0x10da   :  { %s3254_s10 = scalar_lea.hbm %s3974_s17, 128 }
0x10db   :  { %p3255_p5 = scmp.ne.s32.totalorder %s3974_s17, %s3254_s10  ;;  %p3258_p6 = scmp.lt.u32.totalorder %s3254_s10, %s3974_s17 }
0x10dd   :  { %p3260_p7 = pnand %p3258_p6, %p3255_p5 }
0x10df   :  { %3263 = shalt.err (!%p3260_p7)
}
0x10e0   :  { %2511 = dma.vmem_to_hbm [thread:$0]  %s2509_s11, 128, %s3974_s17, [#allocation3]   ;;  %v2497_v41 = vpop.permute.xlu1 %2496  ;;  %v2495_v49 = vpop.permute.xlu0 %2494 }
0x10e1   :  { %s3300_s19 = smov [#allocation4]   ;;  %2501 = vst.msk [vmem:[#allocation4 + $0x8] sm:$0xff] %vm107_vm1, %v2497_v41  ;;  %2500 = vst.msk [vmem:[#allocation4] sm:$0xff] %vm107_vm1, %v2495_v49 }
0x10e2   :  { %s2517_s20 = sshll.u32 %s3300_s19, 4  ;;  %s2518_s20 = int_to_ptr.vmem [resolvable:$true] %s2517_s20 }
0x10e3   :  { %s3264_s21 = scalar_lea.vmem %s2518_s20, 256  ;;  %p3269_p9 = scmp.lt.s32.totalorder %s2518_s20, %s2518_s20 }
0x10e4   :  { %p3265_p8 = scmp.ne.s32.totalorder %s2518_s20, %s3264_s21  ;;  %p3270_p10 = scmp.lt.s32.totalorder %s3264_s21, %s3264_s21 }
0x10e6   :  { %p3271_p11 = por %p3270_p10, %p3269_p9 }
0x10e8   :  { %p3272_p12 = pnand %p3271_p11, %p3265_p8 }
0x10ea   :  { %3275 = shalt.err (!%p3272_p12)
}
0x10eb   :  { %s3276_s17 = scalar_lea.hbm %s3975_s18, 256 }
0x10ec   :  { %p3277_p13 = scmp.ne.s32.totalorder %s3975_s18, %s3276_s17  ;;  %p3280_p0 = scmp.lt.u32.totalorder %s3276_s17, %s3975_s18 }
0x10ee   :  { %p3282_p1 = pnand %p3280_p0, %p3277_p13 }
0x10f0   :  { %3285 = shalt.err (!%p3282_p1)
}
0x10f1   :  { %s3301_s4 = smov 128   ;;  %s3302_s13 = smov 8  }
0x10f2   :  { %2523 = dma.vmem_to_hbm [thread:$0]  %s2518_s20, 256, %s3975_s18, [#allocation5], %s3301_s4, %s3301_s4, %s3302_s13  }
0x10f3   :  { %3286 = dma.done.wait [#allocation3], 128  }
0x10f4   :  { %3287 = vsyncadd [#allocation3], 4294967168 }
0x10f5   :  { %3288 = dma.done.wait [#allocation5], 256  }
0x10f6   :  { %3289 = vsyncadd [#allocation5], 4294967040 }
0x10f7   :  { %2530 = vsyncpa [#allocation3], 1 }
0x10f8   :  { %2531 = vsyncpa [#allocation5], 1 }

</bundles_post_ra>
